<compile_context>
chip_gen: v7x
topology: tpu7x:2x2x1
jax: 0.10.0
libtpu: 0.0.40
codegen_flags: <defaults>
</compile_context>

<pallas_src>
import jax
import jax.numpy as jnp
from jax.experimental import pallas as pl
from jax.experimental.pallas import tpu as pltpu

_LANE = 128
_SINGLE_MAX_W1_BYTES = 16 << 20      # whole bf16 w1 below this -> single-step kernel
_W1_TILE_BUDGET_BYTES = 24 << 20     # budget for the double-buffered bf16 w1 tile (tiled path)


def _round_up(v, m):
    return (v + m - 1) // m * m


def _pick_tile_h(n, hp, budget_bytes):
    """Largest multiple-of-128 divisor of hp whose double-buffered bf16 (n, tile_h) tile fits."""
    m = hp // _LANE
    best = _LANE
    for d in range(1, m + 1):
        if m % d == 0 and 2 * n * (d * _LANE) * 2 <= budget_bytes:
            best = d * _LANE
    return best


def _vmem_limit(block_bytes):
    # 2x for double-buffering + headroom, capped at 48 MiB (safe on v7x's 64 MiB VMEM).
    return int(min(max(2 * block_bytes + (4 << 20), 16 << 20), 48 << 20))


# --------------------------------------------------------------------------------------
# Kernels
# --------------------------------------------------------------------------------------
def _mlp_gate_kernel_single(x_ref, w1_ref, b1_ref, w2_ref, b2_ref, o_ref):
    """Whole problem in one grid step: no accumulator, no pl.when branches."""
    x = x_ref[...]                                                    # (B, N) f32
    h = jnp.dot(x.astype(jnp.bfloat16), w1_ref[...],
                preferred_element_type=jnp.float32)                   # MXU, f32 acc
    h = jnp.maximum(h + b1_ref[...], 0.0)                             # (B, Hp)
    y = jnp.sum(h * w2_ref[...], axis=-1, keepdims=True) + b2_ref[0]  # (B, 1)
    o_ref[...] = (y * x).astype(o_ref.dtype)                          # gate-multiply


def _mlp_gate_kernel_tiled(x_ref, w1_ref, b1_ref, w2_ref, b2_ref, o_ref, xb_sc, y_acc):
    """H-reduction grid for large problems; w1 streamed as contiguous column tiles."""
    k = pl.program_id(0)

    @pl.when(k == 0)
    def _init():
        y_acc[...] = jnp.zeros_like(y_acc)
        xb_sc[...] = x_ref[...].astype(jnp.bfloat16)   # cast x once, reused every H tile

    # fc1 tile: bf16 x bf16 -> f32 accumulate on the MXU, then bias + ReLU.  (B, tile_h)
    h = jnp.dot(xb_sc[...], w1_ref[...], preferred_element_type=jnp.float32)
    h = jnp.maximum(h + b1_ref[...], 0.0)

    # fc2 partial sums: keep the accumulator (B, 128)-wide so the per-step work is pure VPU
    # (static, lane-aligned chunk adds); the single cross-lane reduction happens at the end.
    p = h * w2_ref[...]                                # (B, tile_h) f32
    acc = y_acc[...]
    for t in range(p.shape[-1] // _LANE):              # static unroll
        acc = acc + p[:, t * _LANE:(t + 1) * _LANE]
    y_acc[...] = acc

    @pl.when(k == pl.num_programs(0) - 1)
    def _finalize():
        y = jnp.sum(y_acc[...], axis=-1, keepdims=True) + b2_ref[0]   # (B, 1)
        o_ref[...] = (y * x_ref[...]).astype(o_ref.dtype)


# --------------------------------------------------------------------------------------
# Parameter preparation (padding / layout / path selection)
# --------------------------------------------------------------------------------------
def init_params(key, n):
    """nn.Linear-style U(-1/sqrt(fan_in), 1/sqrt(fan_in)) init, PyTorch layouts, f32."""
    h = int(n * 0.7)
    k1, k2, k3, k4 = jax.random.split(key, 4)
    lim1 = 1.0 / jnp.sqrt(jnp.float32(n))
    lim2 = 1.0 / jnp.sqrt(jnp.float32(h))
    w1 = jax.random.uniform(k1, (h, n), jnp.float32, -lim1, lim1)   # fc1.weight
    b1 = jax.random.uniform(k2, (h,), jnp.float32, -lim1, lim1)     # fc1.bias
    w2 = jax.random.uniform(k3, (1, h), jnp.float32, -lim2, lim2)   # fc2.weight
    b2 = jax.random.uniform(k4, (1,), jnp.float32, -lim2, lim2)     # fc2.bias
    return w1, b1, w2, b2


def prepare_params(w1, b1, w2, b2, *, force_tiled=False,
                   w1_tile_budget_bytes=_W1_TILE_BUDGET_BYTES):
    """Pad H to a lane multiple, cast w1 to bf16, pick single-step vs H-tiled layout."""
    h, n = w1.shape
    hp = _round_up(h, _LANE)
    pad = hp - h
    # Zero-pad H: padded b1/w2 entries are 0, so ReLU(0 + 0) * 0 contributes nothing to fc2.
    w1_t = jnp.pad(w1.T, ((0, 0), (0, pad))).astype(jnp.bfloat16)          # (n, hp) bf16
    b1_p = jnp.pad(b1.reshape(-1), (0, pad)).reshape(1, hp).astype(jnp.float32)
    w2_p = jnp.pad(w2.reshape(-1), (0, pad)).reshape(1, hp).astype(jnp.float32)
    b2_p = b2.reshape(1).astype(jnp.float32)

    if (not force_tiled) and n * hp * 2 <= _SINGLE_MAX_W1_BYTES:
        return dict(mode="single", w1=w1_t, b1=b1_p, w2=w2_p, b2=b2_p,
                    n=n, hp=hp, tile_h=hp)

    tile_h = _pick_tile_h(n, hp, w1_tile_budget_bytes)
    kt = hp // tile_h
    # Contiguous column tiles: tile k = columns [k*tile_h, (k+1)*tile_h) for all n rows.
    w1_tiles = w1_t.reshape(n, kt, tile_h).transpose(1, 0, 2)              # (kt, n, tile_h)
    return dict(mode="tiled", w1=w1_tiles, b1=b1_p, w2=w2_p, b2=b2_p,
                n=n, hp=hp, tile_h=tile_h)


# --------------------------------------------------------------------------------------
# Wrapper
# --------------------------------------------------------------------------------------
def simple_number_based_n2(x, params):
    """x: (B, N) f32; params: output of prepare_params."""
    B, N = x.shape
    assert N == params["n"], (N, params["n"])
    hp, tile_h = params["hp"], params["tile_h"]
    w1, b1, w2, b2 = params["w1"], params["b1"], params["w2"], params["b2"]

    flops = 2 * B * N * hp + 4 * B * hp + 2 * B * N
    bytes_accessed = (x.size * x.dtype.itemsize
                      + w1.size * w1.dtype.itemsize
                      + b1.size * b1.dtype.itemsize
                      + w2.size * w2.dtype.itemsize
                      + b2.size * b2.dtype.itemsize
                      + B * N * x.dtype.itemsize)
    cost = pl.CostEstimate(flops=flops, transcendentals=0, bytes_accessed=bytes_accessed)

    if params["mode"] == "single":
        block_bytes = 2 * B * N * 4 + N * hp * 2 + 2 * hp * 4
        return pl.pallas_call(
            _mlp_gate_kernel_single,
            out_shape=jax.ShapeDtypeStruct((B, N), x.dtype),
            grid=(1,),
            in_specs=[
                pl.BlockSpec((B, N), lambda k: (0, 0)),            # x
                pl.BlockSpec((N, hp), lambda k: (0, 0)),           # w1 (bf16, whole)
                pl.BlockSpec((1, hp), lambda k: (0, 0)),           # b1
                pl.BlockSpec((1, hp), lambda k: (0, 0)),           # w2 as (1, Hp)
                pl.BlockSpec(memory_space=pltpu.MemorySpace.SMEM), # b2 scalar
            ],
            out_specs=pl.BlockSpec((B, N), lambda k: (0, 0)),
            compiler_params=pltpu.CompilerParams(
                dimension_semantics=("arbitrary",),
                vmem_limit_bytes=_vmem_limit(block_bytes),
            ),
            cost_estimate=cost,
        )(x, w1, b1, w2, b2)

    # Tiled H-reduction path (large N): w1 pre-laid out as (kt, N, tile_h) contiguous tiles.
    kt = hp // tile_h
    block_bytes = (2 * B * N * 4            # x + out blocks (f32)
                   + B * N * 2              # bf16 x scratch
                   + N * tile_h * 2         # w1 tile (bf16)
                   + 2 * tile_h * 4         # b1 + w2 tiles
                   + B * _LANE * 4)         # y accumulator
    return pl.pallas_call(
        _mlp_gate_kernel_tiled,
        out_shape=jax.ShapeDtypeStruct((B, N), x.dtype),
        grid=(kt,),
        in_specs=[
            pl.BlockSpec((B, N), lambda k: (0, 0)),                # x (resident)
            pl.BlockSpec((None, N, tile_h), lambda k: (k, 0, 0)),  # contiguous w1 tile (squeezed)
            pl.BlockSpec((1, tile_h), lambda k: (0, k)),           # b1 tile
            pl.BlockSpec((1, tile_h), lambda k: (0, k)),           # w2 tile
            pl.BlockSpec(memory_space=pltpu.MemorySpace.SMEM),     # b2 scalar
        ],
        out_specs=pl.BlockSpec((B, N), lambda k: (0, 0)),          # resident, written at k==last
        scratch_shapes=[
            pltpu.VMEM((B, N), jnp.bfloat16),                      # x cast once
            pltpu.VMEM((B, _LANE), jnp.float32),                   # wide fc2 accumulator
        ],
        compiler_params=pltpu.CompilerParams(
            dimension_semantics=("arbitrary",),                    # H axis is a reduction
            vmem_limit_bytes=_vmem_limit(block_bytes),
        ),
        cost_estimate=cost,
    )(x, w1, b1, w2, b2)


# --------------------------------------------------------------------------------------
# Reference (mirrors the kernel's bf16-matmul / f32-accumulate numerics)
# --------------------------------------------------------------------------------------
def reference_forward(x, w1, b1, w2, b2):
    h = jnp.dot(x.astype(jnp.bfloat16), w1.T.astype(jnp.bfloat16),
                preferred_element_type=jnp.float32) + b1
    h = jnp.maximum(h, 0.0)
    y = jnp.sum(h * w2.reshape(1, -1), axis=-1, keepdims=True) + b2[0]
    return y * x


if __name__ == "__main__":
    key = jax.random.PRNGKey(0)
    kx, kp, kx2 = jax.random.split(key, 3)

    # Module default: n=1024 -> h=716 -> Hp=768.  Small batch.
    N, B = 1024, 8
    x = jax.random.normal(kx, (B, N), jnp.float32)
    raw = init_params(kp, N)

    # 1) Default (single-step) path.
    params = prepare_params(*raw)
    out = jax.block_until_ready(simple_number_based_n2(x, params))
    ref = reference_forward(x, *raw)
    assert out.shape == (B, N)
    assert jnp.allclose(out, ref, atol=2e-3, rtol=2e-3), float(jnp.max(jnp.abs(out - ref)))

    # 2) Exercise the H-tiled reduction path (used when w1 no longer fits the VMEM budget).
    x2 = jax.random.normal(kx2, (B, N), jnp.float32)
    params_t = prepare_params(*raw, force_tiled=True, w1_tile_budget_bytes=1 << 20)
    out2 = jax.block_until_ready(simple_number_based_n2(x2, params_t))
    ref2 = reference_forward(x2, *raw)
    assert jnp.allclose(out2, ref2, atol=2e-3, rtol=2e-3), float(jnp.max(jnp.abs(out2 - ref2)))

    print("KERNEL_OK")
</pallas_src>

<mosaic_0001>
module attributes {stable_mosaic.version = 11 : i64} {
  func.func @_mlp_gate_kernel_single(%arg0: i32, %arg1: memref<8x1024xf32, #tpu.memory_space<vmem>>, %arg2: memref<1024x768xbf16, #tpu.memory_space<vmem>>, %arg3: memref<1x768xf32, #tpu.memory_space<vmem>>, %arg4: memref<1x768xf32, #tpu.memory_space<vmem>>, %arg5: memref<1xf32, #tpu.memory_space<smem>>, %arg6: memref<8x1024xf32, #tpu.memory_space<vmem>>) attributes {dimension_semantics = [#tpu.dimension_semantics<arbitrary>], iteration_bounds = array<i64: 1>, scalar_prefetch = 0 : i64, scratch_operands = 0 : i64, tpu.core_type = #tpu.core_type<tc>, window_params = [{pipeline_mode = #tpu.pipeline_mode<synchronous>, transform_indices = @transform_0, window_bounds = array<i64: 8, 1024>}, {pipeline_mode = #tpu.pipeline_mode<synchronous>, transform_indices = @transform_1, window_bounds = array<i64: 1024, 768>}, {pipeline_mode = #tpu.pipeline_mode<synchronous>, transform_indices = @transform_2, window_bounds = array<i64: 1, 768>}, {pipeline_mode = #tpu.pipeline_mode<synchronous>, transform_indices = @transform_3, window_bounds = array<i64: 1, 768>}, {transform_indices = @transform_4, window_bounds = array<i64: 1>}, {pipeline_mode = #tpu.pipeline_mode<synchronous>, transform_indices = @transform_5, window_bounds = array<i64: 8, 1024>}]} {
    %c0 = arith.constant 0 : index
    %c0_0 = arith.constant 0 : index
    %0 = vector.load %arg1[%c0, %c0_0] : memref<8x1024xf32, #tpu.memory_space<vmem>>, vector<8x1024xf32>
    %1 = arith.truncf %0 : vector<8x1024xf32> to vector<8x1024xbf16>
    %c0_1 = arith.constant 0 : index
    %c0_2 = arith.constant 0 : index
    %2 = vector.load %arg2[%c0_1, %c0_2] : memref<1024x768xbf16, #tpu.memory_space<vmem>>, vector<1024x768xbf16>
    %cst = arith.constant dense<0.000000e+00> : vector<8x768xf32>
    %3 = tpu.matmul %1, %2, %cst {dimension_numbers = #tpu.dot_dimension_numbers<[1], [0], [0], [1], [0, 0, 1, 1], [], []>} : vector<8x1024xbf16>, vector<1024x768xbf16>, vector<8x768xf32> -> vector<8x768xf32>
    %c0_3 = arith.constant 0 : index
    %c0_4 = arith.constant 0 : index
    %4 = vector.load %arg3[%c0_3, %c0_4] : memref<1x768xf32, #tpu.memory_space<vmem>>, vector<1x768xf32>
    %5 = vector.broadcast %4 : vector<1x768xf32> to vector<8x768xf32>
    %6 = arith.addf %3, %5 : vector<8x768xf32>
    %cst_5 = arith.constant 0.000000e+00 : f32
    %7 = vector.broadcast %cst_5 : f32 to vector<8x768xf32>
    %8 = arith.maximumf %6, %7 : vector<8x768xf32>
    %c0_6 = arith.constant 0 : index
    %c0_7 = arith.constant 0 : index
    %9 = vector.load %arg4[%c0_6, %c0_7] : memref<1x768xf32, #tpu.memory_space<vmem>>, vector<1x768xf32>
    %10 = vector.broadcast %9 : vector<1x768xf32> to vector<8x768xf32>
    %11 = arith.mulf %8, %10 : vector<8x768xf32>
    %cst_8 = arith.constant dense<0.000000e+00> : vector<8xf32>
    %12 = vector.multi_reduction <add>, %11, %cst_8 [1] : vector<8x768xf32> to vector<8xf32>
    %13 = vector.shape_cast %12 : vector<8xf32> to vector<8x1xf32>
    %c0_9 = arith.constant 0 : index
    %14 = memref.load %arg5[%c0_9] : memref<1xf32, #tpu.memory_space<smem>>
    %15 = vector.broadcast %14 : f32 to vector<8x1xf32>
    %16 = arith.addf %13, %15 : vector<8x1xf32>
    %17 = vector.broadcast %16 : vector<8x1xf32> to vector<8x1024xf32>
    %18 = arith.mulf %17, %0 : vector<8x1024xf32>
    %c0_10 = arith.constant 0 : index
    %c0_11 = arith.constant 0 : index
    %19 = vector.load %arg6[%c0_10, %c0_11] : memref<8x1024xf32, #tpu.memory_space<vmem>>, vector<8x1024xf32>
    tpu.vector_store %arg6[%c0_10, %c0_11], %18 {strides = array<i32>} : memref<8x1024xf32, #tpu.memory_space<vmem>>, vector<8x1024xf32>,
    return
  }
  func.func @transform_0(%arg0: i32) -> (i32, i32) {
    %c0_i32 = arith.constant 0 : i32
    %c0_i32_0 = arith.constant 0 : i32
    %c0_i32_1 = arith.constant 0 : i32
    return %c0_i32, %c0_i32_0 : i32, i32
  }
  func.func @transform_1(%arg0: i32) -> (i32, i32) {
    %c0_i32 = arith.constant 0 : i32
    %c0_i32_0 = arith.constant 0 : i32
    %c0_i32_1 = arith.constant 0 : i32
    return %c0_i32, %c0_i32_0 : i32, i32
  }
  func.func @transform_2(%arg0: i32) -> (i32, i32) {
    %c0_i32 = arith.constant 0 : i32
    %c0_i32_0 = arith.constant 0 : i32
    %c0_i32_1 = arith.constant 0 : i32
    return %c0_i32, %c0_i32_0 : i32, i32
  }
  func.func @transform_3(%arg0: i32) -> (i32, i32) {
    %c0_i32 = arith.constant 0 : i32
    %c0_i32_0 = arith.constant 0 : i32
    %c0_i32_1 = arith.constant 0 : i32
    return %c0_i32, %c0_i32_0 : i32, i32
  }
  func.func @transform_4(%arg0: i32) -> i32 {
    %c0_i32 = arith.constant 0 : i32
    %c0_i32_0 = arith.constant 0 : i32
    return %c0_i32 : i32
  }
  func.func @transform_5(%arg0: i32) -> (i32, i32) {
    %c0_i32 = arith.constant 0 : i32
    %c0_i32_0 = arith.constant 0 : i32
    %c0_i32_1 = arith.constant 0 : i32
    return %c0_i32, %c0_i32_0 : i32, i32
  }
}

</mosaic_0001>

<bundles_post_ra>
// kernel: tpu_custom_call.1
= control target key start
LH: loop header
LB: loop body
LE: loop exit
PB: predicated region body
PF: predicated region fallthrough
CT: control target
= control target key end

     0   :  { %11 = vsyncpa [#allocation4], 0  ;;  %s4302_s0 = inlined_call_operand.hbm [shape: f32[8,1024], index: 0, kind: input, shape index: {}]   ;;  %s4303_s1 = inlined_call_operand.hbm [shape: bf16[1024,768], index: 1, kind: input, shape index: {}]   ;;  %s4304_s2 = inlined_call_operand.hbm [shape: f32[1,768], index: 2, kind: input, shape index: {}]   ;;  %s4305_s3 = inlined_call_operand.hbm [shape: f32[1,768], index: 3, kind: input, shape index: {}]   ;;  %s4306_s4 = inlined_call_operand.<no memory space> [shape: f32[1], index: 4, kind: input, shape index: {}]   ;;  %s4307_s5 = inlined_call_operand.hbm [shape: f32[8,1024], index: 5, kind: output, shape index: {}]  }
   0x1   :  { %12 = vsyncpa [#allocation7], 0 }
   0x2   :  { %13 = vsyncpa [#allocation10], 0 }
   0x3   :  { %14 = vsyncpa [#allocation5], 0  ;;  %s4135_s18 = smov [#allocation6]   ;;  %s4017_s22 = scalar_lea.hbm %s4303_s1, 49152 }
   0x4   :  { %s30_s19 = sshll.u32 %s4135_s18, 4  ;;  %p4018_p0 = scmp.ne.s32.totalorder %s4303_s1, %s4017_s22  ;;  %s31_s19 = int_to_ptr.vmem [resolvable:$true] %s30_s19 }
   0x5   :  { %p4021_p1 = scmp.lt.u32.totalorder %s4017_s22, %s4303_s1 }
   0x7   :  { %p4023_p2 = pnand %p4021_p1, %p4018_p0 }
   0x9   :  { %4026 = shalt.err (!%p4023_p2)
}
   0xa   :  { %s4027_s27 = scalar_lea.vmem %s31_s19, 49152  ;;  %p4032_p4 = scmp.lt.s32.totalorder %s31_s19, %s31_s19 }
   0xb   :  { %p4028_p3 = scmp.ne.s32.totalorder %s31_s19, %s4027_s27  ;;  %p4033_p5 = scmp.lt.s32.totalorder %s4027_s27, %s4027_s27 }
   0xd   :  { %p4034_p6 = por %p4033_p5, %p4032_p4 }
   0xf   :  { %p4035_p7 = pnand %p4034_p6, %p4028_p3 }
  0x11   :  { %4038 = shalt.err (!%p4035_p7)
}
  0x12   :  { %s4136_s28 = smov 384   ;;  %s4137_s29 = smov 24  }
  0x13   :  { %36 = dma.hbm_to_vmem [thread:$0]  %s4303_s1, 49152, %s31_s19, [#allocation7], %s4136_s28, %s4136_s28, %s4137_s29  }
  0x14   :  { %s4138_s7 = smov [#allocation3]   ;;  %s4139_s9 = smov [#allocation8]  }
  0x15   :  { %s21_s8 = sshll.u32 %s4138_s7, 4  ;;  %s43_s10 = sshll.u32 %s4139_s9, 4  ;;  %s22_s8 = int_to_ptr.vmem [resolvable:$true] %s21_s8  ;;  %s44_s10 = int_to_ptr.vmem [resolvable:$true] %s43_s10 }
  0x16   :  { %s4039_s13 = scalar_lea.hbm %s4302_s0, 1024 }
  0x17   :  { %p4040_p8 = scmp.ne.s32.totalorder %s4302_s0, %s4039_s13  ;;  %p4043_p9 = scmp.lt.u32.totalorder %s4039_s13, %s4302_s0 }
  0x19   :  { %p4045_p10 = pnand %p4043_p9, %p4040_p8 }
  0x1b   :  { %4048 = shalt.err (!%p4045_p10)
}
  0x1c   :  { %s4049_s1 = scalar_lea.vmem %s22_s8, 1024  ;;  %p4054_p12 = scmp.lt.s32.totalorder %s22_s8, %s22_s8 }
  0x1d   :  { %p4050_p11 = scmp.ne.s32.totalorder %s22_s8, %s4049_s1  ;;  %p4055_p13 = scmp.lt.s32.totalorder %s4049_s1, %s4049_s1 }
  0x1f   :  { %p4056_p0 = por %p4055_p13, %p4054_p12 }
  0x21   :  { %p4057_p1 = pnand %p4056_p0, %p4050_p11 }
  0x23   :  { %4060 = shalt.err (!%p4057_p1)
}
  0x24   :  { %24 = dma.hbm_to_vmem [thread:$0]  %s4302_s0, 1024, %s22_s8, [#allocation4]  }
  0x25   :  { %s4061_s22 = scalar_lea.hbm %s4304_s2, 96 }
  0x26   :  { %p4062_p2 = scmp.ne.s32.totalorder %s4304_s2, %s4061_s22  ;;  %p4065_p3 = scmp.lt.u32.totalorder %s4061_s22, %s4304_s2 }
  0x28   :  { %p4067_p4 = pnand %p4065_p3, %p4062_p2 }
  0x2a   :  { %4070 = shalt.err (!%p4067_p4)
}
  0x2b   :  { %s4071_s27 = scalar_lea.vmem %s44_s10, 96  ;;  %p4076_p6 = scmp.lt.s32.totalorder %s44_s10, %s44_s10 }
  0x2c   :  { %p4072_p5 = scmp.ne.s32.totalorder %s44_s10, %s4071_s27  ;;  %p4077_p7 = scmp.lt.s32.totalorder %s4071_s27, %s4071_s27 }
  0x2e   :  { %p4078_p8 = por %p4077_p7, %p4076_p6 }
  0x30   :  { %p4079_p9 = pnand %p4078_p8, %p4072_p5 }
  0x32   :  { %4082 = shalt.err (!%p4079_p9)
}
  0x33   :  { %46 = dma.hbm_to_vmem [thread:$0]  %s4304_s2, 96, %s44_s10, [#allocation7]  }
  0x34   :  { %s4140_s29 = smov [#allocation9]   ;;  %s4083_s8 = scalar_lea.hbm %s4305_s3, 96 }
  0x35   :  { %s53_s30 = sshll.u32 %s4140_s29, 4  ;;  %p4084_p10 = scmp.ne.s32.totalorder %s4305_s3, %s4083_s8  ;;  %s54_s30 = int_to_ptr.vmem [resolvable:$true] %s53_s30 }
  0x36   :  { %p4087_p11 = scmp.lt.u32.totalorder %s4083_s8, %s4305_s3 }
  0x38   :  { %p4089_p12 = pnand %p4087_p11, %p4084_p10 }
  0x3a   :  { %4092 = shalt.err (!%p4089_p12)
}
  0x3b   :  { %s4093_s14 = scalar_lea.vmem %s54_s30, 96  ;;  %p4098_p0 = scmp.lt.s32.totalorder %s54_s30, %s54_s30 }
  0x3c   :  { %p4094_p13 = scmp.ne.s32.totalorder %s54_s30, %s4093_s14  ;;  %p4099_p1 = scmp.lt.s32.totalorder %s4093_s14, %s4093_s14 }
  0x3e   :  { %p4100_p2 = por %p4099_p1, %p4098_p0 }
  0x40   :  { %p4101_p3 = pnand %p4100_p2, %p4094_p13 }
  0x42   :  { %4104 = shalt.err (!%p4101_p3)
}
  0x43   :  { %56 = dma.hbm_to_vmem [thread:$0]  %s4305_s3, 96, %s54_s30, [#allocation10]  }
  0x44   :  { %4127 = dma.done.wait [#allocation4], 1024  }
  0x45   :  { %4128 = vsyncadd [#allocation4], 4294966272 }
  0x46   :  { %4129 = dma.done.wait [#allocation7], 49248  }
  0x47   :  { %4130 = vsyncadd [#allocation7], 4294918048 }
  0x48   :  { %4131 = dma.done.wait [#allocation10], 96  }
  0x49   :  { %4132 = vsyncadd [#allocation10], 4294967200  ;;  %v3433_v0 = vld [vmem:[#allocation6 + $0x4] ss:$24 sps:$4 sm:$0xff]   ;;  %v3437_v2 = vld [vmem:[#allocation6] ss:$24 sps:$4 sm:$0xff]  }
  0x4a   :  { %v3435_v1 = vld [vmem:[#allocation6 + $0x604] ss:$24 sps:$4 sm:$0xff]   ;;  %2423 = vmatprep.subr.bf16.mxu1 %v3433_v0  ;;  %v3438_v3 = vld [vmem:[#allocation6 + $0x600] ss:$24 sps:$4 sm:$0xff]   ;;  %v3439_v4 = vld [vmem:[#allocation6 + $0x34] ss:$24 sps:$4 sm:$0xff]  }
  0x4b   :  { %2505 = vmatprep.subr.bf16.mxu0 %v3435_v1  ;;  %2424 = vmatpush1.bf16.msra.mxu1 %v3437_v2  ;;  %v3441_v5 = vld [vmem:[#allocation6 + $0x634] ss:$24 sps:$4 sm:$0xff]   ;;  %v3443_v6 = vld [vmem:[#allocation6 + $0x30] ss:$24 sps:$4 sm:$0xff]   ;;  %v3445_v8 = vld [vmem:[#allocation6 + $0x64] ss:$24 sps:$4 sm:$0xff]  }
  0x4c   :  { %2506 = vmatpush1.bf16.msra.mxu0 %v3438_v3  ;;  %2425 = vmatprep.subr.bf16.mxu1 %v3439_v4  ;;  %v3444_v7 = vld [vmem:[#allocation6 + $0x630] ss:$24 sps:$4 sm:$0xff]   ;;  %v3447_v9 = vld [vmem:[#allocation6 + $0x664] ss:$24 sps:$4 sm:$0xff]   ;;  %v3449_v10 = vld [vmem:[#allocation6 + $0x60] ss:$24 sps:$4 sm:$0xff]  }
  0x4d   :  { %2507 = vmatprep.subr.bf16.mxu0 %v3441_v5  ;;  %v3450_v11 = vld [vmem:[#allocation6 + $0x660] ss:$24 sps:$4 sm:$0xff]   ;;  %v3451_v12 = vld [vmem:[#allocation6 + $0x94] ss:$24 sps:$4 sm:$0xff]   ;;  %v3455_v14 = vld [vmem:[#allocation6 + $0x90] ss:$24 sps:$4 sm:$0xff]  }
  0x4e   :  { %v3453_v13 = vld [vmem:[#allocation6 + $0x694] ss:$24 sps:$4 sm:$0xff]   ;;  %v3456_v15 = vld [vmem:[#allocation6 + $0x690] ss:$24 sps:$4 sm:$0xff]   ;;  %v3457_v16 = vld [vmem:[#allocation6 + $0xc4] ss:$24 sps:$4 sm:$0xff]  }
  0x4f   :  { %2426 = vmatpush1.bf16.msra.mxu1 %v3443_v6  ;;  %v3459_v17 = vld [vmem:[#allocation6 + $0x6c4] ss:$24 sps:$4 sm:$0xff]   ;;  %v3461_v18 = vld [vmem:[#allocation6 + $0xc0] ss:$24 sps:$4 sm:$0xff]   ;;  %v3463_v20 = vld [vmem:[#allocation6 + $0xf4] ss:$24 sps:$4 sm:$0xff]  }
  0x50   :  { %2508 = vmatpush1.bf16.msra.mxu0 %v3444_v7  ;;  %2427 = vmatprep.subr.bf16.mxu1 %v3445_v8  ;;  %v3462_v19 = vld [vmem:[#allocation6 + $0x6c0] ss:$24 sps:$4 sm:$0xff]   ;;  %v3465_v21 = vld [vmem:[#allocation6 + $0x6f4] ss:$24 sps:$4 sm:$0xff]   ;;  %v3467_v22 = vld [vmem:[#allocation6 + $0xf0] ss:$24 sps:$4 sm:$0xff]  }
  0x51   :  { %2509 = vmatprep.subr.bf16.mxu0 %v3447_v9  ;;  %v3468_v23 = vld [vmem:[#allocation6 + $0x6f0] ss:$24 sps:$4 sm:$0xff]   ;;  %v3469_v24 = vld [vmem:[#allocation6 + $0x124] ss:$24 sps:$4 sm:$0xff]   ;;  %v3473_v26 = vld [vmem:[#allocation6 + $0x120] ss:$24 sps:$4 sm:$0xff]  }
  0x52   :  { %v3471_v25 = vld [vmem:[#allocation6 + $0x724] ss:$24 sps:$4 sm:$0xff]   ;;  %v3474_v27 = vld [vmem:[#allocation6 + $0x720] ss:$24 sps:$4 sm:$0xff]   ;;  %v3475_v28 = vld [vmem:[#allocation6 + $0x154] ss:$24 sps:$4 sm:$0xff]  }
  0x53   :  { %2428 = vmatpush1.bf16.msra.mxu1 %v3449_v10  ;;  %v3477_v29 = vld [vmem:[#allocation6 + $0x754] ss:$24 sps:$4 sm:$0xff]   ;;  %v3479_v30 = vld [vmem:[#allocation6 + $0x150] ss:$24 sps:$4 sm:$0xff]   ;;  %v3481_v32 = vld [vmem:[#allocation6 + $0x184] ss:$24 sps:$4 sm:$0xff]  }
  0x54   :  { %2510 = vmatpush1.bf16.msra.mxu0 %v3450_v11  ;;  %2429 = vmatprep.subr.bf16.mxu1 %v3451_v12  ;;  %v3480_v31 = vld [vmem:[#allocation6 + $0x750] ss:$24 sps:$4 sm:$0xff]   ;;  %v3483_v33 = vld [vmem:[#allocation6 + $0x784] ss:$24 sps:$4 sm:$0xff]   ;;  %v3485_v34 = vld [vmem:[#allocation6 + $0x180] ss:$24 sps:$4 sm:$0xff]  }
  0x55   :  { %2511 = vmatprep.subr.bf16.mxu0 %v3453_v13  ;;  %v3486_v35 = vld [vmem:[#allocation6 + $0x780] ss:$24 sps:$4 sm:$0xff]   ;;  %v3487_v36 = vld [vmem:[#allocation6 + $0x1b4] ss:$24 sps:$4 sm:$0xff]   ;;  %v3491_v38 = vld [vmem:[#allocation6 + $0x1b0] ss:$24 sps:$4 sm:$0xff]  }
  0x56   :  { %v3489_v37 = vld [vmem:[#allocation6 + $0x7b4] ss:$24 sps:$4 sm:$0xff]   ;;  %v3492_v39 = vld [vmem:[#allocation6 + $0x7b0] ss:$24 sps:$4 sm:$0xff]   ;;  %v3493_v40 = vld [vmem:[#allocation6 + $0x1e4] ss:$24 sps:$4 sm:$0xff]  }
  0x57   :  { %2430 = vmatpush1.bf16.msra.mxu1 %v3455_v14  ;;  %v3495_v41 = vld [vmem:[#allocation6 + $0x7e4] ss:$24 sps:$4 sm:$0xff]   ;;  %v3497_v42 = vld [vmem:[#allocation6 + $0x1e0] ss:$24 sps:$4 sm:$0xff]   ;;  %v3499_v44 = vld [vmem:[#allocation6 + $0x214] ss:$24 sps:$4 sm:$0xff]  }
  0x58   :  { %2512 = vmatpush1.bf16.msra.mxu0 %v3456_v15  ;;  %2431 = vmatprep.subr.bf16.mxu1 %v3457_v16  ;;  %v3498_v43 = vld [vmem:[#allocation6 + $0x7e0] ss:$24 sps:$4 sm:$0xff]   ;;  %v3501_v45 = vld [vmem:[#allocation6 + $0x814] ss:$24 sps:$4 sm:$0xff]   ;;  %v3503_v47 = vld [vmem:[#allocation6 + $0x210] ss:$24 sps:$4 sm:$0xff]  }
  0x59   :  { %2513 = vmatprep.subr.bf16.mxu0 %v3459_v17  ;;  %v72_v46 = vld [vmem:[#allocation3 + $0x8] sm:$0xff]  ;;  %v3505_v51 = vld [vmem:[#allocation6 + $0x244] ss:$24 sps:$4 sm:$0xff]   ;;  %v3509_v54 = vld [vmem:[#allocation6 + $0x240] ss:$24 sps:$4 sm:$0xff]   ;;  %s4141_s16 = smov [#allocation11]  }
  0x5a   :  { %v4220_v48 = vpack.c.bf16 %v72_v46, %v72_v46  ;;  %v3504_v49 = vld [vmem:[#allocation6 + $0x810] ss:$24 sps:$4 sm:$0xff]   ;;  %v3507_v52 = vld [vmem:[#allocation6 + $0x844] ss:$24 sps:$4 sm:$0xff]   ;;  %v3510_v55 = vld [vmem:[#allocation6 + $0x840] ss:$24 sps:$4 sm:$0xff]  }
  0x5b   :  { %2432 = vmatpush1.bf16.msra.mxu1 %v3461_v18  ;;  %v76_v50 = vld [vmem:[#allocation3 + $0x28] sm:$0xff]  ;;  %v3517_v60 = vld [vmem:[#allocation6 + $0x2a4] ss:$24 sps:$4 sm:$0xff]   ;;  %v3521_v62 = vld [vmem:[#allocation6 + $0x2a0] ss:$24 sps:$4 sm:$0xff]   ;;  %s2991_s17 = sshll.u32 %s4141_s16, 4  ;;  %s2992_s17 = int_to_ptr.vmem [resolvable:$true] %s2991_s17 }
  0x5c   :  { %2514 = vmatpush1.bf16.msra.mxu0 %v3462_v19  ;;  %2433 = vmatprep.subr.bf16.mxu1 %v3463_v20  ;;  %v4222_v53 = vpack.c.bf16 %v76_v50, %v76_v50  ;;  %v3511_v56 = vld [vmem:[#allocation6 + $0x274] ss:$24 sps:$4 sm:$0xff]   ;;  %v3515_v58 = vld [vmem:[#allocation6 + $0x270] ss:$24 sps:$4 sm:$0xff]   ;;  %v3519_v61 = vld [vmem:[#allocation6 + $0x8a4] ss:$24 sps:$4 sm:$0xff]   ;;  %p4110_p5 = scmp.lt.s32.totalorder %s2992_s17, %s2992_s17 }
  0x5d   :  { %2515 = vmatprep.subr.bf16.mxu0 %v3465_v21  ;;  %2455 = vmatprep.mubr.bf16.mxu1 %v4220_v48  ;;  %v3513_v57 = vld [vmem:[#allocation6 + $0x874] ss:$24 sps:$4 sm:$0xff]   ;;  %v3516_v59 = vld [vmem:[#allocation6 + $0x870] ss:$24 sps:$4 sm:$0xff]   ;;  %v3522_v63 = vld [vmem:[#allocation6 + $0x8a0] ss:$24 sps:$4 sm:$0xff]  }
  0x5e   :  { %2537 = vmatprep.mubr.bf16.mxu0 %v4222_v53  ;;  %v3523_v0 = vld [vmem:[#allocation6 + $0x2d4] ss:$24 sps:$4 sm:$0xff]   ;;  %v3527_v2 = vld [vmem:[#allocation6 + $0x2d0] ss:$24 sps:$4 sm:$0xff]   ;;  %v3531_v4 = vld [vmem:[#allocation6 + $0x304] ss:$24 sps:$4 sm:$0xff]  }
  0x5f   :  { %2434 = vmatpush1.bf16.msra.mxu1 %v3467_v22  ;;  %v3525_v1 = vld [vmem:[#allocation6 + $0x8d4] ss:$24 sps:$4 sm:$0xff]   ;;  %v3528_v3 = vld [vmem:[#allocation6 + $0x8d0] ss:$24 sps:$4 sm:$0xff]   ;;  %v71_v5 = vld [vmem:[#allocation3] sm:$0xff] }
  0x60   :  { %2516 = vmatpush1.bf16.msra.mxu0 %v3468_v23  ;;  %2435 = vmatprep.subr.bf16.mxu1 %v3469_v24  ;;  %v75_v6 = vld [vmem:[#allocation3 + $0x20] sm:$0xff]  ;;  %v4226_v10 = vpack.c.bf16 %v71_v5, %v71_v5  ;;  %v3537_v12 = vld [vmem:[#allocation6 + $0x334] ss:$24 sps:$4 sm:$0xff]   ;;  %v3535_v14 = vld [vmem:[#allocation6 + $0x330] ss:$24 sps:$4 sm:$0xff]  }
  0x61   :  { %2517 = vmatprep.subr.bf16.mxu0 %v3471_v25  ;;  %v3534_v7 = vld [vmem:[#allocation6 + $0x904] ss:$24 sps:$4 sm:$0xff]   ;;  %v3529_v8 = vld [vmem:[#allocation6 + $0x300] ss:$24 sps:$4 sm:$0xff]   ;;  %v4228_v11 = vpack.c.bf16 %v75_v6, %v75_v6  ;;  %v3540_v13 = vld [vmem:[#allocation6 + $0x934] ss:$24 sps:$4 sm:$0xff]  }
  0x62   :  { %v3532_v9 = vld [vmem:[#allocation6 + $0x900] ss:$24 sps:$4 sm:$0xff]   ;;  %v3538_v15 = vld [vmem:[#allocation6 + $0x930] ss:$24 sps:$4 sm:$0xff]   ;;  %v3543_v16 = vld [vmem:[#allocation6 + $0x364] ss:$24 sps:$4 sm:$0xff]  }
  0x63   :  { %2436 = vmatpush1.bf16.msra.mxu1 %v3473_v26  ;;  %v3546_v17 = vld [vmem:[#allocation6 + $0x964] ss:$24 sps:$4 sm:$0xff]   ;;  %v3541_v18 = vld [vmem:[#allocation6 + $0x360] ss:$24 sps:$4 sm:$0xff]   ;;  %v3549_v20 = vld [vmem:[#allocation6 + $0x394] ss:$24 sps:$4 sm:$0xff]  }
  0x64   :  { %2518 = vmatpush1.bf16.msra.mxu0 %v3474_v27  ;;  %2437 = vmatprep.subr.bf16.mxu1 %v3475_v28  ;;  %v3544_v19 = vld [vmem:[#allocation6 + $0x960] ss:$24 sps:$4 sm:$0xff]   ;;  %v3552_v21 = vld [vmem:[#allocation6 + $0x994] ss:$24 sps:$4 sm:$0xff]   ;;  %v3547_v22 = vld [vmem:[#allocation6 + $0x390] ss:$24 sps:$4 sm:$0xff]  }
  0x65   :  { %2519 = vmatprep.subr.bf16.mxu0 %v3477_v29  ;;  %v3550_v23 = vld [vmem:[#allocation6 + $0x990] ss:$24 sps:$4 sm:$0xff]   ;;  %v3555_v24 = vld [vmem:[#allocation6 + $0x3c4] ss:$24 sps:$4 sm:$0xff]   ;;  %v3553_v26 = vld [vmem:[#allocation6 + $0x3c0] ss:$24 sps:$4 sm:$0xff]  }
  0x66   :  { %v3558_v25 = vld [vmem:[#allocation6 + $0x9c4] ss:$24 sps:$4 sm:$0xff]   ;;  %v3556_v27 = vld [vmem:[#allocation6 + $0x9c0] ss:$24 sps:$4 sm:$0xff]   ;;  %v3561_v28 = vld [vmem:[#allocation6 + $0x3f4] ss:$24 sps:$4 sm:$0xff]  }
  0x67   :  { %2438 = vmatpush1.bf16.msra.mxu1 %v3479_v30  ;;  %v3564_v29 = vld [vmem:[#allocation6 + $0x9f4] ss:$24 sps:$4 sm:$0xff]   ;;  %v3559_v30 = vld [vmem:[#allocation6 + $0x3f0] ss:$24 sps:$4 sm:$0xff]   ;;  %v3577_v46 = vld [vmem:[#allocation6 + $0x480] ss:$24 sps:$4 sm:$0xff]  }
  0x68   :  { %2520 = vmatpush1.bf16.msra.mxu0 %v3480_v31  ;;  %2439 = vmatprep.subr.bf16.mxu1 %v3481_v32  ;;  %v3562_v31 = vld [vmem:[#allocation6 + $0x9f0] ss:$24 sps:$4 sm:$0xff]   ;;  %v3567_v32 = vld [vmem:[#allocation6 + $0x424] ss:$24 sps:$4 sm:$0xff]   ;;  %v3588_v50 = vld [vmem:[#allocation6 + $0xab4] ss:$24 sps:$4 sm:$0xff]  }
  0x69   :  { %2521 = vmatprep.subr.bf16.mxu0 %v3483_v33  ;;  %v3570_v33 = vld [vmem:[#allocation6 + $0xa24] ss:$24 sps:$4 sm:$0xff]   ;;  %v3610_v5 = vld [vmem:[#allocation6 + $0xb70] ss:$24 sps:$4 sm:$0xff]  }
  0x6a   :  { %v3615_v6 = vld [vmem:[#allocation6 + $0x5a4] ss:$24 sps:$4 sm:$0xff]  }
  0x6b   :  { %2440 = vmatpush1.bf16.msra.mxu1 %v3485_v34  ;;  %v74_v34 = vld [vmem:[#allocation3 + $0x18] sm:$0xff] }
  0x6c   :  { %2522 = vmatpush1.bf16.msra.mxu0 %v3486_v35  ;;  %2441 = vmatprep.subr.bf16.mxu1 %v3487_v36  ;;  %v3565_v35 = vld [vmem:[#allocation6 + $0x420] ss:$24 sps:$4 sm:$0xff]  }
  0x6d   :  { %2523 = vmatprep.subr.bf16.mxu0 %v3489_v37  ;;  %v3568_v36 = vld [vmem:[#allocation6 + $0xa20] ss:$24 sps:$4 sm:$0xff]   ;;  %v4232_v37 = vpack.c.bf16 %v74_v34, %v74_v34 }
  0x6e   :  { %v3643_v34 = vld [vmem:[#allocation6 + $0x98] ss:$24 sps:$4 sm:$0xff]  }
  0x6f   :  { %2442 = vmatpush1.bf16.msra.mxu1 %v3491_v38  ;;  %v78_v38 = vld [vmem:[#allocation3 + $0x38] sm:$0xff] }
  0x70   :  { %2524 = vmatpush1.bf16.msra.mxu0 %v3492_v39  ;;  %2443 = vmatprep.subr.bf16.mxu1 %v3493_v40  ;;  %v3573_v39 = vld [vmem:[#allocation6 + $0x454] ss:$24 sps:$4 sm:$0xff]   ;;  %v4234_v40 = vpack.c.bf16 %v78_v38, %v78_v38 }
  0x71   :  { %2525 = vmatprep.subr.bf16.mxu0 %v3495_v41  ;;  %v3576_v41 = vld [vmem:[#allocation6 + $0xa54] ss:$24 sps:$4 sm:$0xff]  }
  0x72   :  { %v3654_v38 = vld [vmem:[#allocation6 + $0xd4] ss:$24 sps:$4 sm:$0xff]  }
  0x73   :  { %2444 = vmatpush1.bf16.msra.mxu1 %v3497_v42  ;;  %v3571_v42 = vld [vmem:[#allocation6 + $0x450] ss:$24 sps:$4 sm:$0xff]  }
  0x74   :  { %2526 = vmatpush1.bf16.msra.mxu0 %v3498_v43  ;;  %2445 = vmatprep.subr.bf16.mxu1 %v3499_v44  ;;  %v3574_v43 = vld [vmem:[#allocation6 + $0xa50] ss:$24 sps:$4 sm:$0xff]   ;;  %v3579_v44 = vld [vmem:[#allocation6 + $0x484] ss:$24 sps:$4 sm:$0xff]  }
  0x75   :  { %2527 = vmatprep.subr.bf16.mxu0 %v3501_v45  ;;  %v3582_v45 = vld [vmem:[#allocation6 + $0xa84] ss:$24 sps:$4 sm:$0xff]  }
  0x77   :  { %2446 = vmatpush1.bf16.msra.mxu1 %v3503_v47  ;;  %v3580_v47 = vld [vmem:[#allocation6 + $0xa80] ss:$24 sps:$4 sm:$0xff]  }
  0x78   :  { %2528 = vmatpush1.bf16.msra.mxu0 %v3504_v49  ;;  %2447 = vmatprep.subr.bf16.mxu1 %v3505_v51  ;;  %v3585_v49 = vld [vmem:[#allocation6 + $0x4b4] ss:$24 sps:$4 sm:$0xff]   ;;  %v3583_v51 = vld [vmem:[#allocation6 + $0x4b0] ss:$24 sps:$4 sm:$0xff]  }
  0x79   :  { %2529 = vmatprep.subr.bf16.mxu0 %v3507_v52  ;;  %v3586_v52 = vld [vmem:[#allocation6 + $0xab0] ss:$24 sps:$4 sm:$0xff]  }
  0x7b   :  { %2448 = vmatpush1.bf16.msra.mxu1 %v3509_v54  ;;  %v3591_v54 = vld [vmem:[#allocation6 + $0x4e4] ss:$24 sps:$4 sm:$0xff]  }
  0x7c   :  { %2530 = vmatpush1.bf16.msra.mxu0 %v3510_v55  ;;  %2449 = vmatprep.subr.bf16.mxu1 %v3511_v56  ;;  %v3594_v55 = vld [vmem:[#allocation6 + $0xae4] ss:$24 sps:$4 sm:$0xff]   ;;  %v3589_v56 = vld [vmem:[#allocation6 + $0x4e0] ss:$24 sps:$4 sm:$0xff]  }
  0x7d   :  { %2531 = vmatprep.subr.bf16.mxu0 %v3513_v57  ;;  %v3592_v57 = vld [vmem:[#allocation6 + $0xae0] ss:$24 sps:$4 sm:$0xff]  }
  0x7f   :  { %2450 = vmatpush1.bf16.msra.mxu1 %v3515_v58  ;;  %v3597_v58 = vld [vmem:[#allocation6 + $0x514] ss:$24 sps:$4 sm:$0xff]  }
  0x80   :  { %2532 = vmatpush1.bf16.msra.mxu0 %v3516_v59  ;;  %2451 = vmatprep.subr.bf16.mxu1 %v3517_v60  ;;  %v3600_v59 = vld [vmem:[#allocation6 + $0xb14] ss:$24 sps:$4 sm:$0xff]   ;;  %v3595_v60 = vld [vmem:[#allocation6 + $0x510] ss:$24 sps:$4 sm:$0xff]  }
  0x81   :  { %2533 = vmatprep.subr.bf16.mxu0 %v3519_v61  ;;  %v3598_v61 = vld [vmem:[#allocation6 + $0xb10] ss:$24 sps:$4 sm:$0xff]  }
  0x83   :  { %2452 = vmatpush1.bf16.msra.mxu1 %v3521_v62  ;;  %v3603_v62 = vld [vmem:[#allocation6 + $0x544] ss:$24 sps:$4 sm:$0xff]  }
  0x84   :  { %2534 = vmatpush1.bf16.msra.mxu0 %v3522_v63  ;;  %2453 = vmatprep.subr.bf16.mxu1 %v3523_v0  ;;  %v3606_v63 = vld [vmem:[#allocation6 + $0xb44] ss:$24 sps:$4 sm:$0xff]   ;;  %v3601_v0 = vld [vmem:[#allocation6 + $0x540] ss:$24 sps:$4 sm:$0xff]  }
  0x85   :  { %2535 = vmatprep.subr.bf16.mxu0 %v3525_v1  ;;  %v3604_v1 = vld [vmem:[#allocation6 + $0xb40] ss:$24 sps:$4 sm:$0xff]  }
  0x87   :  { %2454 = vmatpush1.bf16.msra.mxu1 %v3527_v2  ;;  %v3609_v2 = vld [vmem:[#allocation6 + $0x574] ss:$24 sps:$4 sm:$0xff]  }
  0x88   :  { %2536 = vmatpush1.bf16.msra.mxu0 %v3528_v3  ;;  %2464 = vmatprep.subr.bf16.mxu1 %v3531_v4  ;;  %v3612_v3 = vld [vmem:[#allocation6 + $0xb74] ss:$24 sps:$4 sm:$0xff]   ;;  %v3607_v4 = vld [vmem:[#allocation6 + $0x570] ss:$24 sps:$4 sm:$0xff]  }
  0x89   :  { %2546 = vmatprep.subr.bf16.mxu0 %v3534_v7  ;;  %v3618_v7 = vld [vmem:[#allocation6 + $0xba4] ss:$24 sps:$4 sm:$0xff]  }
  0x8a   :  { %2456 = vmatmul.mubr.bf16.vlgmr.msra.gmra.mrb[0].mxu1 %v4226_v10 }
  0x8b   :  { %2538 = vmatmul.mubr.bf16.vlgmr.msra.gmra.mrb[0].mxu0 %v4228_v11  ;;  %2465 = vmatpush1.bf16.msra.mxu1 %v3529_v8  ;;  %v3613_v8 = vld [vmem:[#allocation6 + $0x5a0] ss:$24 sps:$4 sm:$0xff]  }
  0x8c   :  { %2547 = vmatpush1.bf16.msra.mxu0 %v3532_v9  ;;  %2466 = vmatprep.subr.bf16.mxu1 %v3537_v12  ;;  %v3616_v9 = vld [vmem:[#allocation6 + $0xba0] ss:$24 sps:$4 sm:$0xff]   ;;  %v3621_v12 = vld [vmem:[#allocation6 + $0x5d4] ss:$24 sps:$4 sm:$0xff]  }
  0x8d   :  { %2548 = vmatprep.subr.bf16.mxu0 %v3540_v13  ;;  %2496 = vmatprep.mubr.bf16.mxu1 %v4232_v37  ;;  %v3624_v13 = vld [vmem:[#allocation6 + $0xbd4] ss:$24 sps:$4 sm:$0xff]  }
  0x8e   :  { %2578 = vmatprep.mubr.bf16.mxu0 %v4234_v40 }
  0x8f   :  { %2467 = vmatpush1.bf16.msra.mxu1 %v3535_v14  ;;  %v3619_v14 = vld [vmem:[#allocation6 + $0x5d0] ss:$24 sps:$4 sm:$0xff]  }
  0x90   :  { %2549 = vmatpush1.bf16.msra.mxu0 %v3538_v15  ;;  %2468 = vmatprep.subr.bf16.mxu1 %v3543_v16  ;;  %v3622_v15 = vld [vmem:[#allocation6 + $0xbd0] ss:$24 sps:$4 sm:$0xff]  }
  0x91   :  { %2550 = vmatprep.subr.bf16.mxu0 %v3546_v17  ;;  %v73_v16 = vld [vmem:[#allocation3 + $0x10] sm:$0xff] }
  0x92   :  { %v77_v17 = vld [vmem:[#allocation3 + $0x30] sm:$0xff] }
  0x93   :  { %2469 = vmatpush1.bf16.msra.mxu1 %v3541_v18  ;;  %v3627_v18 = vld [vmem:[#allocation6 + $0xc] ss:$24 sps:$4 sm:$0xff]  }
  0x94   :  { %2551 = vmatpush1.bf16.msra.mxu0 %v3544_v19  ;;  %2470 = vmatprep.subr.bf16.mxu1 %v3549_v20  ;;  %v3630_v19 = vld [vmem:[#allocation6 + $0x14] ss:$24 sps:$4 sm:$0xff]   ;;  %v4238_v20 = vpack.c.bf16 %v73_v16, %v73_v16  ;;  %v3706_v16 = vld [vmem:[#allocation6 + $0x280] ss:$24 sps:$4 sm:$0xff]  }
  0x95   :  { %2552 = vmatprep.subr.bf16.mxu0 %v3552_v21  ;;  %v4240_v21 = vpack.c.bf16 %v77_v17, %v77_v17  ;;  %v3711_v17 = vld [vmem:[#allocation6 + $0x2ac] ss:$24 sps:$4 sm:$0xff]  }
  0x97   :  { %2471 = vmatpush1.bf16.msra.mxu1 %v3547_v22  ;;  %v3625_v22 = vld [vmem:[#allocation6 + $0x8] ss:$24 sps:$4 sm:$0xff]  }
  0x98   :  { %2553 = vmatpush1.bf16.msra.mxu0 %v3550_v23  ;;  %2472 = vmatprep.subr.bf16.mxu1 %v3555_v24  ;;  %v3628_v23 = vld [vmem:[#allocation6 + $0x10] ss:$24 sps:$4 sm:$0xff]   ;;  %v3633_v24 = vld [vmem:[#allocation6 + $0x3c] ss:$24 sps:$4 sm:$0xff]  }
  0x99   :  { %2554 = vmatprep.subr.bf16.mxu0 %v3558_v25  ;;  %v3636_v25 = vld [vmem:[#allocation6 + $0x44] ss:$24 sps:$4 sm:$0xff]  }
  0x9b   :  { %2473 = vmatpush1.bf16.msra.mxu1 %v3553_v26  ;;  %v3631_v26 = vld [vmem:[#allocation6 + $0x38] ss:$24 sps:$4 sm:$0xff]  }
  0x9c   :  { %2555 = vmatpush1.bf16.msra.mxu0 %v3556_v27  ;;  %2474 = vmatprep.subr.bf16.mxu1 %v3561_v28  ;;  %v3634_v27 = vld [vmem:[#allocation6 + $0x40] ss:$24 sps:$4 sm:$0xff]   ;;  %v3639_v28 = vld [vmem:[#allocation6 + $0x6c] ss:$24 sps:$4 sm:$0xff]  }
  0x9d   :  { %2556 = vmatprep.subr.bf16.mxu0 %v3564_v29  ;;  %v3642_v29 = vld [vmem:[#allocation6 + $0x74] ss:$24 sps:$4 sm:$0xff]  }
  0x9f   :  { %2475 = vmatpush1.bf16.msra.mxu1 %v3559_v30  ;;  %v3637_v30 = vld [vmem:[#allocation6 + $0x68] ss:$24 sps:$4 sm:$0xff]  }
  0xa0   :  { %2557 = vmatpush1.bf16.msra.mxu0 %v3562_v31  ;;  %2476 = vmatprep.subr.bf16.mxu1 %v3567_v32  ;;  %v3640_v31 = vld [vmem:[#allocation6 + $0x70] ss:$24 sps:$4 sm:$0xff]   ;;  %v3645_v32 = vld [vmem:[#allocation6 + $0x9c] ss:$24 sps:$4 sm:$0xff]  }
  0xa1   :  { %2558 = vmatprep.subr.bf16.mxu0 %v3570_v33  ;;  %v3648_v33 = vld [vmem:[#allocation6 + $0xa4] ss:$24 sps:$4 sm:$0xff]  }
  0xa3   :  { %2477 = vmatpush1.bf16.msra.mxu1 %v3565_v35  ;;  %v3646_v35 = vld [vmem:[#allocation6 + $0xa0] ss:$24 sps:$4 sm:$0xff]  }
  0xa4   :  { %2559 = vmatpush1.bf16.msra.mxu0 %v3568_v36  ;;  %2478 = vmatprep.subr.bf16.mxu1 %v3573_v39  ;;  %v3651_v36 = vld [vmem:[#allocation6 + $0xcc] ss:$24 sps:$4 sm:$0xff]   ;;  %v3649_v39 = vld [vmem:[#allocation6 + $0xc8] ss:$24 sps:$4 sm:$0xff]  }
  0xa5   :  { %2560 = vmatprep.subr.bf16.mxu0 %v3576_v41  ;;  %v3652_v41 = vld [vmem:[#allocation6 + $0xd0] ss:$24 sps:$4 sm:$0xff]  }
  0xa7   :  { %2479 = vmatpush1.bf16.msra.mxu1 %v3571_v42  ;;  %v3660_v42 = vld [vmem:[#allocation6 + $0x104] ss:$24 sps:$4 sm:$0xff]  }
  0xa8   :  { %2561 = vmatpush1.bf16.msra.mxu0 %v3574_v43  ;;  %2480 = vmatprep.subr.bf16.mxu1 %v3579_v44  ;;  %v3655_v43 = vld [vmem:[#allocation6 + $0xf8] ss:$24 sps:$4 sm:$0xff]  }
  0xa9   :  { %2562 = vmatprep.subr.bf16.mxu0 %v3582_v45  ;;  %v3658_v44 = vld [vmem:[#allocation6 + $0x100] ss:$24 sps:$4 sm:$0xff]   ;;  %v3663_v45 = vld [vmem:[#allocation6 + $0x12c] ss:$24 sps:$4 sm:$0xff]  }
  0xab   :  { %2481 = vmatpush1.bf16.msra.mxu1 %v3577_v46  ;;  %v3666_v46 = vld [vmem:[#allocation6 + $0x134] ss:$24 sps:$4 sm:$0xff]  }
  0xac   :  { %2563 = vmatpush1.bf16.msra.mxu0 %v3580_v47  ;;  %2482 = vmatprep.subr.bf16.mxu1 %v3585_v49  ;;  %v3661_v47 = vld [vmem:[#allocation6 + $0x128] ss:$24 sps:$4 sm:$0xff]  }
  0xad   :  { %2564 = vmatprep.subr.bf16.mxu0 %v3588_v50  ;;  %v3664_v49 = vld [vmem:[#allocation6 + $0x130] ss:$24 sps:$4 sm:$0xff]   ;;  %v3669_v50 = vld [vmem:[#allocation6 + $0x15c] ss:$24 sps:$4 sm:$0xff]  }
  0xaf   :  { %2483 = vmatpush1.bf16.msra.mxu1 %v3583_v51  ;;  %v3672_v51 = vld [vmem:[#allocation6 + $0x164] ss:$24 sps:$4 sm:$0xff]  }
  0xb0   :  { %2565 = vmatpush1.bf16.msra.mxu0 %v3586_v52  ;;  %2484 = vmatprep.subr.bf16.mxu1 %v3591_v54  ;;  %v3667_v52 = vld [vmem:[#allocation6 + $0x158] ss:$24 sps:$4 sm:$0xff]  }
  0xb1   :  { %2566 = vmatprep.subr.bf16.mxu0 %v3594_v55  ;;  %v3670_v54 = vld [vmem:[#allocation6 + $0x160] ss:$24 sps:$4 sm:$0xff]   ;;  %v3675_v55 = vld [vmem:[#allocation6 + $0x18c] ss:$24 sps:$4 sm:$0xff]  }
  0xb3   :  { %2485 = vmatpush1.bf16.msra.mxu1 %v3589_v56  ;;  %v3678_v56 = vld [vmem:[#allocation6 + $0x194] ss:$24 sps:$4 sm:$0xff]  }
  0xb4   :  { %2567 = vmatpush1.bf16.msra.mxu0 %v3592_v57  ;;  %2486 = vmatprep.subr.bf16.mxu1 %v3597_v58  ;;  %v3673_v57 = vld [vmem:[#allocation6 + $0x188] ss:$24 sps:$4 sm:$0xff]  }
  0xb5   :  { %2568 = vmatprep.subr.bf16.mxu0 %v3600_v59  ;;  %v3676_v58 = vld [vmem:[#allocation6 + $0x190] ss:$24 sps:$4 sm:$0xff]   ;;  %v3681_v59 = vld [vmem:[#allocation6 + $0x1bc] ss:$24 sps:$4 sm:$0xff]  }
  0xb7   :  { %2487 = vmatpush1.bf16.msra.mxu1 %v3595_v60  ;;  %v3684_v60 = vld [vmem:[#allocation6 + $0x1c4] ss:$24 sps:$4 sm:$0xff]  }
  0xb8   :  { %2569 = vmatpush1.bf16.msra.mxu0 %v3598_v61  ;;  %2488 = vmatprep.subr.bf16.mxu1 %v3603_v62  ;;  %v3679_v61 = vld [vmem:[#allocation6 + $0x1b8] ss:$24 sps:$4 sm:$0xff]  }
  0xb9   :  { %2570 = vmatprep.subr.bf16.mxu0 %v3606_v63  ;;  %v3682_v62 = vld [vmem:[#allocation6 + $0x1c0] ss:$24 sps:$4 sm:$0xff]   ;;  %v3687_v63 = vld [vmem:[#allocation6 + $0x1ec] ss:$24 sps:$4 sm:$0xff]  }
  0xbb   :  { %2489 = vmatpush1.bf16.msra.mxu1 %v3601_v0  ;;  %v3690_v0 = vld [vmem:[#allocation6 + $0x1f4] ss:$24 sps:$4 sm:$0xff]  }
  0xbc   :  { %2571 = vmatpush1.bf16.msra.mxu0 %v3604_v1  ;;  %2490 = vmatprep.subr.bf16.mxu1 %v3609_v2  ;;  %v3685_v1 = vld [vmem:[#allocation6 + $0x1e8] ss:$24 sps:$4 sm:$0xff]  }
  0xbd   :  { %2572 = vmatprep.subr.bf16.mxu0 %v3612_v3  ;;  %v3688_v2 = vld [vmem:[#allocation6 + $0x1f0] ss:$24 sps:$4 sm:$0xff]   ;;  %v3693_v3 = vld [vmem:[#allocation6 + $0x21c] ss:$24 sps:$4 sm:$0xff]  }
  0xbf   :  { %2491 = vmatpush1.bf16.msra.mxu1 %v3607_v4  ;;  %v3696_v4 = vld [vmem:[#allocation6 + $0x224] ss:$24 sps:$4 sm:$0xff]  }
  0xc0   :  { %2573 = vmatpush1.bf16.msra.mxu0 %v3610_v5  ;;  %2492 = vmatprep.subr.bf16.mxu1 %v3615_v6  ;;  %v3691_v5 = vld [vmem:[#allocation6 + $0x218] ss:$24 sps:$4 sm:$0xff]  }
  0xc1   :  { %2574 = vmatprep.subr.bf16.mxu0 %v3618_v7  ;;  %v3694_v6 = vld [vmem:[#allocation6 + $0x220] ss:$24 sps:$4 sm:$0xff]   ;;  %v3699_v7 = vld [vmem:[#allocation6 + $0x24c] ss:$24 sps:$4 sm:$0xff]  }
  0xc3   :  { %2493 = vmatpush1.bf16.msra.mxu1 %v3613_v8  ;;  %v3702_v8 = vld [vmem:[#allocation6 + $0x254] ss:$24 sps:$4 sm:$0xff]  }
  0xc4   :  { %2575 = vmatpush1.bf16.msra.mxu0 %v3616_v9  ;;  %2494 = vmatprep.subr.bf16.mxu1 %v3621_v12  ;;  %v3697_v9 = vld [vmem:[#allocation6 + $0x248] ss:$24 sps:$4 sm:$0xff]  }
  0xc5   :  { %2576 = vmatprep.subr.bf16.mxu0 %v3624_v13  ;;  %v3700_v12 = vld [vmem:[#allocation6 + $0x250] ss:$24 sps:$4 sm:$0xff]   ;;  %v3705_v13 = vld [vmem:[#allocation6 + $0x27c] ss:$24 sps:$4 sm:$0xff]  }
  0xc7   :  { %2495 = vmatpush1.bf16.msra.mxu1 %v3619_v14  ;;  %v3708_v14 = vld [vmem:[#allocation6 + $0x284] ss:$24 sps:$4 sm:$0xff]  }
  0xc8   :  { %2577 = vmatpush1.bf16.msra.mxu0 %v3622_v15  ;;  %2587 = vmatprep.subr.bf16.mxu1 %v3627_v18  ;;  %v3703_v15 = vld [vmem:[#allocation6 + $0x278] ss:$24 sps:$4 sm:$0xff]   ;;  %v3714_v18 = vld [vmem:[#allocation6 + $0x2b4] ss:$24 sps:$4 sm:$0xff]  }
  0xc9   :  { %2751 = vmatprep.subr.bf16.mxu0 %v3630_v19  ;;  %v3709_v19 = vld [vmem:[#allocation6 + $0x2a8] ss:$24 sps:$4 sm:$0xff]  }
  0xca   :  { %2497 = vmatmul.mubr.bf16.vlgmr.msra.gmra.mrb[0].mxu1 %v4238_v20 }
  0xcb   :  { %2579 = vmatmul.mubr.bf16.vlgmr.msra.gmra.mrb[0].mxu0 %v4240_v21  ;;  %2588 = vmatpush1.bf16.msra.mxu1 %v3625_v22  ;;  %v3712_v22 = vld [vmem:[#allocation6 + $0x2b0] ss:$24 sps:$4 sm:$0xff]  }
  0xcc   :  { %2752 = vmatpush1.bf16.msra.mxu0 %v3628_v23  ;;  %2589 = vmatprep.subr.bf16.mxu1 %v3633_v24  ;;  %v3717_v23 = vld [vmem:[#allocation6 + $0x2dc] ss:$24 sps:$4 sm:$0xff]  }
  0xcd   :  { %2753 = vmatprep.subr.bf16.mxu0 %v3636_v25  ;;  %2619 = vmatprep.mubr.bf16.mxu1 %v4220_v48  ;;  %v3720_v24 = vld [vmem:[#allocation6 + $0x2e4] ss:$24 sps:$4 sm:$0xff]   ;;  %v3715_v25 = vld [vmem:[#allocation6 + $0x2d8] ss:$24 sps:$4 sm:$0xff]  }
  0xce   :  { %2783 = vmatprep.mubr.bf16.mxu0 %v4220_v48  ;;  %v3657_v48 = vld [vmem:[#allocation6 + $0xfc] ss:$24 sps:$4 sm:$0xff]  }
  0xcf   :  { %2590 = vmatpush1.bf16.msra.mxu1 %v3631_v26  ;;  %v3718_v26 = vld [vmem:[#allocation6 + $0x2e0] ss:$24 sps:$4 sm:$0xff]  }
  0xd0   :  { %2754 = vmatpush1.bf16.msra.mxu0 %v3634_v27  ;;  %2591 = vmatprep.subr.bf16.mxu1 %v3639_v28  ;;  %v3723_v27 = vld [vmem:[#allocation6 + $0x30c] ss:$24 sps:$4 sm:$0xff]  }
  0xd1   :  { %2755 = vmatprep.subr.bf16.mxu0 %v3642_v29  ;;  %v3726_v28 = vld [vmem:[#allocation6 + $0x314] ss:$24 sps:$4 sm:$0xff]   ;;  %v3721_v29 = vld [vmem:[#allocation6 + $0x308] ss:$24 sps:$4 sm:$0xff]  }
  0xd3   :  { %2592 = vmatpush1.bf16.msra.mxu1 %v3637_v30  ;;  %v3724_v30 = vld [vmem:[#allocation6 + $0x310] ss:$24 sps:$4 sm:$0xff]  }
  0xd4   :  { %2756 = vmatpush1.bf16.msra.mxu0 %v3640_v31  ;;  %2593 = vmatprep.subr.bf16.mxu1 %v3645_v32  ;;  %v3729_v31 = vld [vmem:[#allocation6 + $0x33c] ss:$24 sps:$4 sm:$0xff]  }
  0xd5   :  { %2757 = vmatprep.subr.bf16.mxu0 %v3648_v33  ;;  %v3732_v32 = vld [vmem:[#allocation6 + $0x344] ss:$24 sps:$4 sm:$0xff]   ;;  %v3727_v33 = vld [vmem:[#allocation6 + $0x338] ss:$24 sps:$4 sm:$0xff]  }
  0xd7   :  { %2594 = vmatpush1.bf16.msra.mxu1 %v3643_v34  ;;  %v3730_v34 = vld [vmem:[#allocation6 + $0x340] ss:$24 sps:$4 sm:$0xff]  }
  0xd8   :  { %2758 = vmatpush1.bf16.msra.mxu0 %v3646_v35  ;;  %2595 = vmatprep.subr.bf16.mxu1 %v3651_v36  ;;  %v3735_v35 = vld [vmem:[#allocation6 + $0x36c] ss:$24 sps:$4 sm:$0xff]  }
  0xd9   :  { %2759 = vmatprep.subr.bf16.mxu0 %v3654_v38  ;;  %v3738_v36 = vld [vmem:[#allocation6 + $0x374] ss:$24 sps:$4 sm:$0xff]   ;;  %v3733_v38 = vld [vmem:[#allocation6 + $0x368] ss:$24 sps:$4 sm:$0xff]  }
  0xdb   :  { %2596 = vmatpush1.bf16.msra.mxu1 %v3649_v39  ;;  %v3736_v39 = vld [vmem:[#allocation6 + $0x370] ss:$24 sps:$4 sm:$0xff]  }
  0xdc   :  { %2760 = vmatpush1.bf16.msra.mxu0 %v3652_v41  ;;  %2597 = vmatprep.subr.bf16.mxu1 %v3657_v48  ;;  %v3741_v41 = vld [vmem:[#allocation6 + $0x39c] ss:$24 sps:$4 sm:$0xff]   ;;  %v3739_v48 = vld [vmem:[#allocation6 + $0x398] ss:$24 sps:$4 sm:$0xff]  }
  0xdd   :  { %2761 = vmatprep.subr.bf16.mxu0 %v3660_v42  ;;  %v3742_v42 = vld [vmem:[#allocation6 + $0x3a0] ss:$24 sps:$4 sm:$0xff]  }
  0xdf   :  { %2598 = vmatpush1.bf16.msra.mxu1 %v3655_v43  ;;  %v3747_v43 = vld [vmem:[#allocation6 + $0x3cc] ss:$24 sps:$4 sm:$0xff]  }
  0xe0   :  { %2762 = vmatpush1.bf16.msra.mxu0 %v3658_v44  ;;  %2599 = vmatprep.subr.bf16.mxu1 %v3663_v45  ;;  %v3750_v44 = vld [vmem:[#allocation6 + $0x3d4] ss:$24 sps:$4 sm:$0xff]   ;;  %v3745_v45 = vld [vmem:[#allocation6 + $0x3c8] ss:$24 sps:$4 sm:$0xff]  }
  0xe1   :  { %2763 = vmatprep.subr.bf16.mxu0 %v3666_v46  ;;  %v3748_v46 = vld [vmem:[#allocation6 + $0x3d0] ss:$24 sps:$4 sm:$0xff]  }
  0xe3   :  { %2600 = vmatpush1.bf16.msra.mxu1 %v3661_v47  ;;  %v3756_v47 = vld [vmem:[#allocation6 + $0x404] ss:$24 sps:$4 sm:$0xff]  }
  0xe4   :  { %2764 = vmatpush1.bf16.msra.mxu0 %v3664_v49  ;;  %2601 = vmatprep.subr.bf16.mxu1 %v3669_v50  ;;  %v3751_v49 = vld [vmem:[#allocation6 + $0x3f8] ss:$24 sps:$4 sm:$0xff]  }
  0xe5   :  { %2765 = vmatprep.subr.bf16.mxu0 %v3672_v51  ;;  %v3754_v50 = vld [vmem:[#allocation6 + $0x400] ss:$24 sps:$4 sm:$0xff]   ;;  %v3759_v51 = vld [vmem:[#allocation6 + $0x42c] ss:$24 sps:$4 sm:$0xff]  }
  0xe7   :  { %2602 = vmatpush1.bf16.msra.mxu1 %v3667_v52  ;;  %v3762_v52 = vld [vmem:[#allocation6 + $0x434] ss:$24 sps:$4 sm:$0xff]  }
  0xe8   :  { %2766 = vmatpush1.bf16.msra.mxu0 %v3670_v54  ;;  %2603 = vmatprep.subr.bf16.mxu1 %v3675_v55  ;;  %v3757_v54 = vld [vmem:[#allocation6 + $0x428] ss:$24 sps:$4 sm:$0xff]  }
  0xe9   :  { %2767 = vmatprep.subr.bf16.mxu0 %v3678_v56  ;;  %v3760_v55 = vld [vmem:[#allocation6 + $0x430] ss:$24 sps:$4 sm:$0xff]   ;;  %v3765_v56 = vld [vmem:[#allocation6 + $0x45c] ss:$24 sps:$4 sm:$0xff]  }
  0xeb   :  { %2604 = vmatpush1.bf16.msra.mxu1 %v3673_v57  ;;  %v3768_v57 = vld [vmem:[#allocation6 + $0x464] ss:$24 sps:$4 sm:$0xff]  }
  0xec   :  { %2768 = vmatpush1.bf16.msra.mxu0 %v3676_v58  ;;  %2605 = vmatprep.subr.bf16.mxu1 %v3681_v59  ;;  %v3763_v58 = vld [vmem:[#allocation6 + $0x458] ss:$24 sps:$4 sm:$0xff]  }
  0xed   :  { %2769 = vmatprep.subr.bf16.mxu0 %v3684_v60  ;;  %v3766_v59 = vld [vmem:[#allocation6 + $0x460] ss:$24 sps:$4 sm:$0xff]   ;;  %v3771_v60 = vld [vmem:[#allocation6 + $0x48c] ss:$24 sps:$4 sm:$0xff]  }
  0xef   :  { %2606 = vmatpush1.bf16.msra.mxu1 %v3679_v61  ;;  %v3774_v61 = vld [vmem:[#allocation6 + $0x494] ss:$24 sps:$4 sm:$0xff]  }
  0xf0   :  { %2770 = vmatpush1.bf16.msra.mxu0 %v3682_v62  ;;  %2607 = vmatprep.subr.bf16.mxu1 %v3687_v63  ;;  %v3769_v62 = vld [vmem:[#allocation6 + $0x488] ss:$24 sps:$4 sm:$0xff]  }
  0xf1   :  { %2771 = vmatprep.subr.bf16.mxu0 %v3690_v0  ;;  %v3772_v63 = vld [vmem:[#allocation6 + $0x490] ss:$24 sps:$4 sm:$0xff]   ;;  %v3777_v0 = vld [vmem:[#allocation6 + $0x4bc] ss:$24 sps:$4 sm:$0xff]  }
  0xf3   :  { %2608 = vmatpush1.bf16.msra.mxu1 %v3685_v1  ;;  %v3780_v1 = vld [vmem:[#allocation6 + $0x4c4] ss:$24 sps:$4 sm:$0xff]  }
  0xf4   :  { %2772 = vmatpush1.bf16.msra.mxu0 %v3688_v2  ;;  %2609 = vmatprep.subr.bf16.mxu1 %v3693_v3  ;;  %v3775_v2 = vld [vmem:[#allocation6 + $0x4b8] ss:$24 sps:$4 sm:$0xff]  }
  0xf5   :  { %2773 = vmatprep.subr.bf16.mxu0 %v3696_v4  ;;  %v3778_v3 = vld [vmem:[#allocation6 + $0x4c0] ss:$24 sps:$4 sm:$0xff]   ;;  %v3783_v4 = vld [vmem:[#allocation6 + $0x4ec] ss:$24 sps:$4 sm:$0xff]  }
  0xf7   :  { %2610 = vmatpush1.bf16.msra.mxu1 %v3691_v5  ;;  %v3786_v5 = vld [vmem:[#allocation6 + $0x4f4] ss:$24 sps:$4 sm:$0xff]  }
  0xf8   :  { %2774 = vmatpush1.bf16.msra.mxu0 %v3694_v6  ;;  %2611 = vmatprep.subr.bf16.mxu1 %v3699_v7  ;;  %v3781_v6 = vld [vmem:[#allocation6 + $0x4e8] ss:$24 sps:$4 sm:$0xff]  }
  0xf9   :  { %2775 = vmatprep.subr.bf16.mxu0 %v3702_v8  ;;  %v3784_v7 = vld [vmem:[#allocation6 + $0x4f0] ss:$24 sps:$4 sm:$0xff]   ;;  %v3789_v8 = vld [vmem:[#allocation6 + $0x51c] ss:$24 sps:$4 sm:$0xff]  }
  0xfb   :  { %2612 = vmatpush1.bf16.msra.mxu1 %v3697_v9  ;;  %v3792_v9 = vld [vmem:[#allocation6 + $0x524] ss:$24 sps:$4 sm:$0xff]  }
  0xfc   :  { %2776 = vmatpush1.bf16.msra.mxu0 %v3700_v12  ;;  %2613 = vmatprep.subr.bf16.mxu1 %v3705_v13  ;;  %v3787_v12 = vld [vmem:[#allocation6 + $0x518] ss:$24 sps:$4 sm:$0xff]  }
  0xfd   :  { %2777 = vmatprep.subr.bf16.mxu0 %v3708_v14  ;;  %v3790_v13 = vld [vmem:[#allocation6 + $0x520] ss:$24 sps:$4 sm:$0xff]   ;;  %v3795_v14 = vld [vmem:[#allocation6 + $0x54c] ss:$24 sps:$4 sm:$0xff]  }
  0xff   :  { %2614 = vmatpush1.bf16.msra.mxu1 %v3703_v15  ;;  %v3798_v15 = vld [vmem:[#allocation6 + $0x554] ss:$24 sps:$4 sm:$0xff]  }
 0x100   :  { %2778 = vmatpush1.bf16.msra.mxu0 %v3706_v16  ;;  %2615 = vmatprep.subr.bf16.mxu1 %v3711_v17  ;;  %v3793_v16 = vld [vmem:[#allocation6 + $0x548] ss:$24 sps:$4 sm:$0xff]  }
 0x101   :  { %2779 = vmatprep.subr.bf16.mxu0 %v3714_v18  ;;  %v3796_v17 = vld [vmem:[#allocation6 + $0x550] ss:$24 sps:$4 sm:$0xff]   ;;  %v3801_v18 = vld [vmem:[#allocation6 + $0x57c] ss:$24 sps:$4 sm:$0xff]  }
 0x103   :  { %2616 = vmatpush1.bf16.msra.mxu1 %v3709_v19  ;;  %v3804_v19 = vld [vmem:[#allocation6 + $0x584] ss:$24 sps:$4 sm:$0xff]  }
 0x104   :  { %2780 = vmatpush1.bf16.msra.mxu0 %v3712_v22  ;;  %2617 = vmatprep.subr.bf16.mxu1 %v3717_v23  ;;  %v3799_v22 = vld [vmem:[#allocation6 + $0x578] ss:$24 sps:$4 sm:$0xff]  }
 0x105   :  { %2781 = vmatprep.subr.bf16.mxu0 %v3720_v24  ;;  %v3802_v23 = vld [vmem:[#allocation6 + $0x580] ss:$24 sps:$4 sm:$0xff]   ;;  %v3807_v24 = vld [vmem:[#allocation6 + $0x5ac] ss:$24 sps:$4 sm:$0xff]  }
 0x107   :  { %2618 = vmatpush1.bf16.msra.mxu1 %v3715_v25  ;;  %v3810_v25 = vld [vmem:[#allocation6 + $0x5b4] ss:$24 sps:$4 sm:$0xff]  }
 0x108   :  { %2782 = vmatpush1.bf16.msra.mxu0 %v3718_v26  ;;  %2628 = vmatprep.subr.bf16.mxu1 %v3723_v27  ;;  %v3805_v26 = vld [vmem:[#allocation6 + $0x5a8] ss:$24 sps:$4 sm:$0xff]  }
 0x109   :  { %2792 = vmatprep.subr.bf16.mxu0 %v3726_v28  ;;  %v3808_v27 = vld [vmem:[#allocation6 + $0x5b0] ss:$24 sps:$4 sm:$0xff]   ;;  %v3813_v28 = vld [vmem:[#allocation6 + $0x5dc] ss:$24 sps:$4 sm:$0xff]  }
 0x10a   :  { %2620 = vmatmul.mubr.bf16.vlgmr.msra.gmra.mrb[4].mxu1 %v4226_v10 }
 0x10b   :  { %2784 = vmatmul.mubr.bf16.vlgmr.msra.gmra.mrb[4].mxu0 %v4226_v10  ;;  %2629 = vmatpush1.bf16.msra.mxu1 %v3721_v29  ;;  %v3744_v10 = vld [vmem:[#allocation6 + $0x3a4] ss:$24 sps:$4 sm:$0xff]  }
 0x10c   :  { %2793 = vmatpush1.bf16.msra.mxu0 %v3724_v30  ;;  %2630 = vmatprep.subr.bf16.mxu1 %v3729_v31  ;;  %v3816_v29 = vld [vmem:[#allocation6 + $0x5e4] ss:$24 sps:$4 sm:$0xff]   ;;  %v3811_v30 = vld [vmem:[#allocation6 + $0x5d8] ss:$24 sps:$4 sm:$0xff]  }
 0x10d   :  { %2794 = vmatprep.subr.bf16.mxu0 %v3732_v32  ;;  %2660 = vmatprep.mubr.bf16.mxu1 %v4232_v37  ;;  %v3814_v31 = vld [vmem:[#allocation6 + $0x5e0] ss:$24 sps:$4 sm:$0xff]   ;;  %v3819_v32 = vld [vmem:[#allocation6 + $0x60c] ss:$24 sps:$4 sm:$0xff]  }
 0x10e   :  { %2824 = vmatprep.mubr.bf16.mxu0 %v4232_v37  ;;  %v3753_v37 = vld [vmem:[#allocation6 + $0x3fc] ss:$24 sps:$4 sm:$0xff]  }
 0x10f   :  { %2631 = vmatpush1.bf16.msra.mxu1 %v3727_v33  ;;  %v3822_v33 = vld [vmem:[#allocation6 + $0x614] ss:$24 sps:$4 sm:$0xff]  }
 0x110   :  { %2795 = vmatpush1.bf16.msra.mxu0 %v3730_v34  ;;  %2632 = vmatprep.subr.bf16.mxu1 %v3735_v35  ;;  %v3817_v34 = vld [vmem:[#allocation6 + $0x608] ss:$24 sps:$4 sm:$0xff]  }
 0x111   :  { %2796 = vmatprep.subr.bf16.mxu0 %v3738_v36  ;;  %v3820_v35 = vld [vmem:[#allocation6 + $0x610] ss:$24 sps:$4 sm:$0xff]   ;;  %v3825_v36 = vld [vmem:[#allocation6 + $0x63c] ss:$24 sps:$4 sm:$0xff]  }
 0x113   :  { %2633 = vmatpush1.bf16.msra.mxu1 %v3733_v38  ;;  %v3828_v38 = vld [vmem:[#allocation6 + $0x644] ss:$24 sps:$4 sm:$0xff]  }
 0x114   :  { %2797 = vmatpush1.bf16.msra.mxu0 %v3736_v39  ;;  %2634 = vmatprep.subr.bf16.mxu1 %v3741_v41  ;;  %v3823_v39 = vld [vmem:[#allocation6 + $0x638] ss:$24 sps:$4 sm:$0xff]  }
 0x115   :  { %2798 = vmatprep.subr.bf16.mxu0 %v3744_v10  ;;  %v3826_v41 = vld [vmem:[#allocation6 + $0x640] ss:$24 sps:$4 sm:$0xff]   ;;  %v3831_v10 = vld [vmem:[#allocation6 + $0x66c] ss:$24 sps:$4 sm:$0xff]  }
 0x117   :  { %2635 = vmatpush1.bf16.msra.mxu1 %v3739_v48  ;;  %v3834_v48 = vld [vmem:[#allocation6 + $0x674] ss:$24 sps:$4 sm:$0xff]  }
 0x118   :  { %2799 = vmatpush1.bf16.msra.mxu0 %v3742_v42  ;;  %2636 = vmatprep.subr.bf16.mxu1 %v3747_v43  ;;  %v3829_v42 = vld [vmem:[#allocation6 + $0x668] ss:$24 sps:$4 sm:$0xff]  }
 0x119   :  { %2800 = vmatprep.subr.bf16.mxu0 %v3750_v44  ;;  %v3832_v43 = vld [vmem:[#allocation6 + $0x670] ss:$24 sps:$4 sm:$0xff]   ;;  %v3837_v44 = vld [vmem:[#allocation6 + $0x69c] ss:$24 sps:$4 sm:$0xff]  }
 0x11b   :  { %2637 = vmatpush1.bf16.msra.mxu1 %v3745_v45  ;;  %v3835_v45 = vld [vmem:[#allocation6 + $0x698] ss:$24 sps:$4 sm:$0xff]  }
 0x11c   :  { %2801 = vmatpush1.bf16.msra.mxu0 %v3748_v46  ;;  %2638 = vmatprep.subr.bf16.mxu1 %v3753_v37  ;;  %v3838_v46 = vld [vmem:[#allocation6 + $0x6a0] ss:$24 sps:$4 sm:$0xff]   ;;  %v3843_v37 = vld [vmem:[#allocation6 + $0x6cc] ss:$24 sps:$4 sm:$0xff]  }
 0x11d   :  { %2802 = vmatprep.subr.bf16.mxu0 %v3756_v47  ;;  %v3846_v47 = vld [vmem:[#allocation6 + $0x6d4] ss:$24 sps:$4 sm:$0xff]  }
 0x11f   :  { %2639 = vmatpush1.bf16.msra.mxu1 %v3751_v49  ;;  %v3841_v49 = vld [vmem:[#allocation6 + $0x6c8] ss:$24 sps:$4 sm:$0xff]  }
 0x120   :  { %2803 = vmatpush1.bf16.msra.mxu0 %v3754_v50  ;;  %2640 = vmatprep.subr.bf16.mxu1 %v3759_v51  ;;  %v3849_v50 = vld [vmem:[#allocation6 + $0x6fc] ss:$24 sps:$4 sm:$0xff]  }
 0x121   :  { %2804 = vmatprep.subr.bf16.mxu0 %v3762_v52  ;;  %v3852_v51 = vld [vmem:[#allocation6 + $0x704] ss:$24 sps:$4 sm:$0xff]   ;;  %v3847_v52 = vld [vmem:[#allocation6 + $0x6f8] ss:$24 sps:$4 sm:$0xff]  }
 0x123   :  { %2641 = vmatpush1.bf16.msra.mxu1 %v3757_v54  ;;  %v3850_v54 = vld [vmem:[#allocation6 + $0x700] ss:$24 sps:$4 sm:$0xff]  }
 0x124   :  { %2805 = vmatpush1.bf16.msra.mxu0 %v3760_v55  ;;  %2642 = vmatprep.subr.bf16.mxu1 %v3765_v56  ;;  %v3855_v55 = vld [vmem:[#allocation6 + $0x72c] ss:$24 sps:$4 sm:$0xff]  }
 0x125   :  { %2806 = vmatprep.subr.bf16.mxu0 %v3768_v57  ;;  %v3858_v56 = vld [vmem:[#allocation6 + $0x734] ss:$24 sps:$4 sm:$0xff]   ;;  %v3853_v57 = vld [vmem:[#allocation6 + $0x728] ss:$24 sps:$4 sm:$0xff]  }
 0x127   :  { %2643 = vmatpush1.bf16.msra.mxu1 %v3763_v58  ;;  %v3856_v58 = vld [vmem:[#allocation6 + $0x730] ss:$24 sps:$4 sm:$0xff]  }
 0x128   :  { %2807 = vmatpush1.bf16.msra.mxu0 %v3766_v59  ;;  %2644 = vmatprep.subr.bf16.mxu1 %v3771_v60  ;;  %v3861_v59 = vld [vmem:[#allocation6 + $0x75c] ss:$24 sps:$4 sm:$0xff]  }
 0x129   :  { %2808 = vmatprep.subr.bf16.mxu0 %v3774_v61  ;;  %v3864_v60 = vld [vmem:[#allocation6 + $0x764] ss:$24 sps:$4 sm:$0xff]   ;;  %v3859_v61 = vld [vmem:[#allocation6 + $0x758] ss:$24 sps:$4 sm:$0xff]  }
 0x12b   :  { %2645 = vmatpush1.bf16.msra.mxu1 %v3769_v62  ;;  %v3862_v62 = vld [vmem:[#allocation6 + $0x760] ss:$24 sps:$4 sm:$0xff]  }
 0x12c   :  { %2809 = vmatpush1.bf16.msra.mxu0 %v3772_v63  ;;  %2646 = vmatprep.subr.bf16.mxu1 %v3777_v0  ;;  %v3867_v63 = vld [vmem:[#allocation6 + $0x78c] ss:$24 sps:$4 sm:$0xff]  }
 0x12d   :  { %2810 = vmatprep.subr.bf16.mxu0 %v3780_v1  ;;  %v3870_v0 = vld [vmem:[#allocation6 + $0x794] ss:$24 sps:$4 sm:$0xff]   ;;  %v3865_v1 = vld [vmem:[#allocation6 + $0x788] ss:$24 sps:$4 sm:$0xff]  }
 0x12f   :  { %2647 = vmatpush1.bf16.msra.mxu1 %v3775_v2  ;;  %v3868_v2 = vld [vmem:[#allocation6 + $0x790] ss:$24 sps:$4 sm:$0xff]  }
 0x130   :  { %2811 = vmatpush1.bf16.msra.mxu0 %v3778_v3  ;;  %2648 = vmatprep.subr.bf16.mxu1 %v3783_v4  ;;  %v3873_v3 = vld [vmem:[#allocation6 + $0x7bc] ss:$24 sps:$4 sm:$0xff]  }
 0x131   :  { %2812 = vmatprep.subr.bf16.mxu0 %v3786_v5  ;;  %v3876_v4 = vld [vmem:[#allocation6 + $0x7c4] ss:$24 sps:$4 sm:$0xff]   ;;  %v3871_v5 = vld [vmem:[#allocation6 + $0x7b8] ss:$24 sps:$4 sm:$0xff]  }
 0x133   :  { %2649 = vmatpush1.bf16.msra.mxu1 %v3781_v6  ;;  %v3874_v6 = vld [vmem:[#allocation6 + $0x7c0] ss:$24 sps:$4 sm:$0xff]  }
 0x134   :  { %2813 = vmatpush1.bf16.msra.mxu0 %v3784_v7  ;;  %2650 = vmatprep.subr.bf16.mxu1 %v3789_v8  ;;  %v3879_v7 = vld [vmem:[#allocation6 + $0x7ec] ss:$24 sps:$4 sm:$0xff]  }
 0x135   :  { %2814 = vmatprep.subr.bf16.mxu0 %v3792_v9  ;;  %v3882_v8 = vld [vmem:[#allocation6 + $0x7f4] ss:$24 sps:$4 sm:$0xff]   ;;  %v3877_v9 = vld [vmem:[#allocation6 + $0x7e8] ss:$24 sps:$4 sm:$0xff]  }
 0x137   :  { %2651 = vmatpush1.bf16.msra.mxu1 %v3787_v12  ;;  %v3880_v12 = vld [vmem:[#allocation6 + $0x7f0] ss:$24 sps:$4 sm:$0xff]  }
 0x138   :  { %2815 = vmatpush1.bf16.msra.mxu0 %v3790_v13  ;;  %2652 = vmatprep.subr.bf16.mxu1 %v3795_v14  ;;  %v3885_v13 = vld [vmem:[#allocation6 + $0x81c] ss:$24 sps:$4 sm:$0xff]  }
 0x139   :  { %2816 = vmatprep.subr.bf16.mxu0 %v3798_v15  ;;  %v3888_v14 = vld [vmem:[#allocation6 + $0x824] ss:$24 sps:$4 sm:$0xff]   ;;  %v3883_v15 = vld [vmem:[#allocation6 + $0x818] ss:$24 sps:$4 sm:$0xff]  }
 0x13b   :  { %2653 = vmatpush1.bf16.msra.mxu1 %v3793_v16  ;;  %v3886_v16 = vld [vmem:[#allocation6 + $0x820] ss:$24 sps:$4 sm:$0xff]  }
 0x13c   :  { %2817 = vmatpush1.bf16.msra.mxu0 %v3796_v17  ;;  %2654 = vmatprep.subr.bf16.mxu1 %v3801_v18  ;;  %v3891_v17 = vld [vmem:[#allocation6 + $0x84c] ss:$24 sps:$4 sm:$0xff]  }
 0x13d   :  { %2818 = vmatprep.subr.bf16.mxu0 %v3804_v19  ;;  %v3894_v18 = vld [vmem:[#allocation6 + $0x854] ss:$24 sps:$4 sm:$0xff]   ;;  %v3889_v19 = vld [vmem:[#allocation6 + $0x848] ss:$24 sps:$4 sm:$0xff]  }
 0x13f   :  { %2655 = vmatpush1.bf16.msra.mxu1 %v3799_v22  ;;  %v3892_v22 = vld [vmem:[#allocation6 + $0x850] ss:$24 sps:$4 sm:$0xff]  }
 0x140   :  { %2819 = vmatpush1.bf16.msra.mxu0 %v3802_v23  ;;  %2656 = vmatprep.subr.bf16.mxu1 %v3807_v24  ;;  %v3897_v23 = vld [vmem:[#allocation6 + $0x87c] ss:$24 sps:$4 sm:$0xff]  }
 0x141   :  { %2820 = vmatprep.subr.bf16.mxu0 %v3810_v25  ;;  %v3900_v24 = vld [vmem:[#allocation6 + $0x884] ss:$24 sps:$4 sm:$0xff]   ;;  %v3895_v25 = vld [vmem:[#allocation6 + $0x878] ss:$24 sps:$4 sm:$0xff]  }
 0x143   :  { %2657 = vmatpush1.bf16.msra.mxu1 %v3805_v26  ;;  %v3898_v26 = vld [vmem:[#allocation6 + $0x880] ss:$24 sps:$4 sm:$0xff]  }
 0x144   :  { %2821 = vmatpush1.bf16.msra.mxu0 %v3808_v27  ;;  %2658 = vmatprep.subr.bf16.mxu1 %v3813_v28  ;;  %v3903_v27 = vld [vmem:[#allocation6 + $0x8ac] ss:$24 sps:$4 sm:$0xff]  }
 0x145   :  { %2822 = vmatprep.subr.bf16.mxu0 %v3816_v29  ;;  %v3906_v28 = vld [vmem:[#allocation6 + $0x8b4] ss:$24 sps:$4 sm:$0xff]   ;;  %v3901_v29 = vld [vmem:[#allocation6 + $0x8a8] ss:$24 sps:$4 sm:$0xff]  }
 0x147   :  { %2659 = vmatpush1.bf16.msra.mxu1 %v3811_v30  ;;  %v3904_v30 = vld [vmem:[#allocation6 + $0x8b0] ss:$24 sps:$4 sm:$0xff]  }
 0x148   :  { %2823 = vmatpush1.bf16.msra.mxu0 %v3814_v31  ;;  %2669 = vmatprep.subr.bf16.mxu1 %v3819_v32  ;;  %v3909_v31 = vld [vmem:[#allocation6 + $0x8dc] ss:$24 sps:$4 sm:$0xff]  }
 0x149   :  { %2833 = vmatprep.subr.bf16.mxu0 %v3822_v33  ;;  %v3912_v32 = vld [vmem:[#allocation6 + $0x8e4] ss:$24 sps:$4 sm:$0xff]   ;;  %v3907_v33 = vld [vmem:[#allocation6 + $0x8d8] ss:$24 sps:$4 sm:$0xff]  }
 0x14a   :  { %2661 = vmatmul.mubr.bf16.vlgmr.msra.gmra.mrb[4].mxu1 %v4238_v20 }
 0x14b   :  { %2825 = vmatmul.mubr.bf16.vlgmr.msra.gmra.mrb[4].mxu0 %v4238_v20  ;;  %2670 = vmatpush1.bf16.msra.mxu1 %v3817_v34  ;;  %v3840_v20 = vld [vmem:[#allocation6 + $0x6a4] ss:$24 sps:$4 sm:$0xff]   ;;  %v3910_v34 = vld [vmem:[#allocation6 + $0x8e0] ss:$24 sps:$4 sm:$0xff]  }
 0x14c   :  { %2834 = vmatpush1.bf16.msra.mxu0 %v3820_v35  ;;  %2671 = vmatprep.subr.bf16.mxu1 %v3825_v36  ;;  %v3915_v35 = vld [vmem:[#allocation6 + $0x90c] ss:$24 sps:$4 sm:$0xff]  }
 0x14d   :  { %2835 = vmatprep.subr.bf16.mxu0 %v3828_v38  ;;  %2701 = vmatprep.mubr.bf16.mxu1 %v4222_v53  ;;  %v3918_v36 = vld [vmem:[#allocation6 + $0x914] ss:$24 sps:$4 sm:$0xff]   ;;  %v3913_v38 = vld [vmem:[#allocation6 + $0x908] ss:$24 sps:$4 sm:$0xff]  }
 0x14e   :  { %2865 = vmatprep.mubr.bf16.mxu0 %v4222_v53  ;;  %v3844_v53 = vld [vmem:[#allocation6 + $0x6d0] ss:$24 sps:$4 sm:$0xff]  }
 0x14f   :  { %2672 = vmatpush1.bf16.msra.mxu1 %v3823_v39  ;;  %v3916_v39 = vld [vmem:[#allocation6 + $0x910] ss:$24 sps:$4 sm:$0xff]  }
 0x150   :  { %2836 = vmatpush1.bf16.msra.mxu0 %v3826_v41  ;;  %2673 = vmatprep.subr.bf16.mxu1 %v3831_v10  ;;  %v3921_v41 = vld [vmem:[#allocation6 + $0x93c] ss:$24 sps:$4 sm:$0xff]  }
 0x151   :  { %2837 = vmatprep.subr.bf16.mxu0 %v3834_v48  ;;  %v3924_v10 = vld [vmem:[#allocation6 + $0x944] ss:$24 sps:$4 sm:$0xff]   ;;  %v3919_v48 = vld [vmem:[#allocation6 + $0x938] ss:$24 sps:$4 sm:$0xff]  }
 0x153   :  { %2674 = vmatpush1.bf16.msra.mxu1 %v3829_v42  ;;  %v3922_v42 = vld [vmem:[#allocation6 + $0x940] ss:$24 sps:$4 sm:$0xff]  }
 0x154   :  { %2838 = vmatpush1.bf16.msra.mxu0 %v3832_v43  ;;  %2675 = vmatprep.subr.bf16.mxu1 %v3837_v44  ;;  %v3927_v43 = vld [vmem:[#allocation6 + $0x96c] ss:$24 sps:$4 sm:$0xff]  }
 0x155   :  { %2839 = vmatprep.subr.bf16.mxu0 %v3840_v20  ;;  %v3930_v44 = vld [vmem:[#allocation6 + $0x974] ss:$24 sps:$4 sm:$0xff]   ;;  %v473_v20 = vlaneseq }
 0x157   :  { %2676 = vmatpush1.bf16.msra.mxu1 %v3835_v45  ;;  %v3925_v45 = vld [vmem:[#allocation6 + $0x968] ss:$24 sps:$4 sm:$0xff]  }
 0x158   :  { %2840 = vmatpush1.bf16.msra.mxu0 %v3838_v46  ;;  %2677 = vmatprep.subr.bf16.mxu1 %v3843_v37  ;;  %v3928_v46 = vld [vmem:[#allocation6 + $0x970] ss:$24 sps:$4 sm:$0xff]   ;;  %v3936_v37 = vld [vmem:[#allocation6 + $0x9a4] ss:$24 sps:$4 sm:$0xff]  }
 0x159   :  { %2841 = vmatprep.subr.bf16.mxu0 %v3846_v47  ;;  %v4258_v47 = vshrl.u32 %v473_v20, 7  ;;  %v3979_v20 = vld [vmem:[#allocation6 + $0xb18] ss:$24 sps:$4 sm:$0xff]  }
 0x15b   :  { %2678 = vmatpush1.bf16.msra.mxu1 %v3841_v49  ;;  %v3931_v49 = vld [vmem:[#allocation6 + $0x998] ss:$24 sps:$4 sm:$0xff]  }
 0x15c   :  { %2842 = vmatpush1.bf16.msra.mxu0 %v3844_v53  ;;  %2679 = vmatprep.subr.bf16.mxu1 %v3849_v50  ;;  %v3934_v53 = vld [vmem:[#allocation6 + $0x9a0] ss:$24 sps:$4 sm:$0xff]   ;;  %v3939_v50 = vld [vmem:[#allocation6 + $0x9cc] ss:$24 sps:$4 sm:$0xff]  }
 0x15d   :  { %2843 = vmatprep.subr.bf16.mxu0 %v3852_v51  ;;  %v3942_v51 = vld [vmem:[#allocation6 + $0x9d4] ss:$24 sps:$4 sm:$0xff]  }
 0x15f   :  { %2680 = vmatpush1.bf16.msra.mxu1 %v3847_v52  ;;  %v479_v52 = vsub.s32 1, %v4258_v47 }
 0x160   :  { %2844 = vmatpush1.bf16.msra.mxu0 %v3850_v54  ;;  %2681 = vmatprep.subr.bf16.mxu1 %v3855_v55  ;;  %v3937_v54 = vld [vmem:[#allocation6 + $0x9c8] ss:$24 sps:$4 sm:$0xff]  }
 0x161   :  { %2845 = vmatprep.subr.bf16.mxu0 %v3858_v56  ;;  %v3940_v55 = vld [vmem:[#allocation6 + $0x9d0] ss:$24 sps:$4 sm:$0xff]   ;;  %v4262_v56 = vld [vmem:[#allocation8] sm:$0x3f] }
 0x163   :  { %2682 = vmatpush1.bf16.msra.mxu1 %v3853_v57  ;;  %v3945_v57 = vld [vmem:[#allocation6 + $0x9fc] ss:$24 sps:$4 sm:$0xff]  }
 0x164   :  { %2846 = vmatpush1.bf16.msra.mxu0 %v3856_v58  ;;  %2683 = vmatprep.subr.bf16.mxu1 %v3861_v59  ;;  %v3948_v58 = vld [vmem:[#allocation6 + $0xa04] ss:$24 sps:$4 sm:$0xff]  }
 0x165   :  { %2847 = vmatprep.subr.bf16.mxu0 %v3864_v60  ;;  %v480_v60 = vrot.slane %v4262_v56, %v479_v52 }
 0x167   :  { %2684 = vmatpush1.bf16.msra.mxu1 %v3859_v61  ;;  %v3943_v61 = vld [vmem:[#allocation6 + $0x9f8] ss:$24 sps:$4 sm:$0xff]  }
 0x168   :  { %2848 = vmatpush1.bf16.msra.mxu0 %v3862_v62  ;;  %2685 = vmatprep.subr.bf16.mxu1 %v3867_v63  ;;  %v3946_v62 = vld [vmem:[#allocation6 + $0xa00] ss:$24 sps:$4 sm:$0xff]   ;;  %v3951_v63 = vld [vmem:[#allocation6 + $0xa2c] ss:$24 sps:$4 sm:$0xff]  }
 0x169   :  { %2849 = vmatprep.subr.bf16.mxu0 %v3870_v0  ;;  %v3954_v0 = vld [vmem:[#allocation6 + $0xa34] ss:$24 sps:$4 sm:$0xff]  }
 0x16b   :  { %2686 = vmatpush1.bf16.msra.mxu1 %v3865_v1 }
 0x16c   :  { %2850 = vmatpush1.bf16.msra.mxu0 %v3868_v2  ;;  %2687 = vmatprep.subr.bf16.mxu1 %v3873_v3  ;;  %v4266_v3 = vld [vmem:[#allocation9] sm:$0x3f] }
 0x16d   :  { %2851 = vmatprep.subr.bf16.mxu0 %v3876_v4 }
 0x16f   :  { %2688 = vmatpush1.bf16.msra.mxu1 %v3871_v5 }
 0x170   :  { %2852 = vmatpush1.bf16.msra.mxu0 %v3874_v6  ;;  %2689 = vmatprep.subr.bf16.mxu1 %v3879_v7 }
 0x171   :  { %2853 = vmatprep.subr.bf16.mxu0 %v3882_v8 }
 0x173   :  { %2690 = vmatpush1.bf16.msra.mxu1 %v3877_v9 }
 0x174   :  { %2854 = vmatpush1.bf16.msra.mxu0 %v3880_v12  ;;  %2691 = vmatprep.subr.bf16.mxu1 %v3885_v13  ;;  %v3949_v12 = vld [vmem:[#allocation6 + $0xa28] ss:$24 sps:$4 sm:$0xff]  }
 0x175   :  { %2855 = vmatprep.subr.bf16.mxu0 %v3888_v14  ;;  %v3952_v13 = vld [vmem:[#allocation6 + $0xa30] ss:$24 sps:$4 sm:$0xff]  }
 0x177   :  { %2692 = vmatpush1.bf16.msra.mxu1 %v3883_v15 }
 0x178   :  { %2856 = vmatpush1.bf16.msra.mxu0 %v3886_v16  ;;  %2693 = vmatprep.subr.bf16.mxu1 %v3891_v17 }
 0x179   :  { %2857 = vmatprep.subr.bf16.mxu0 %v3894_v18  ;;  %v3957_v18 = vld [vmem:[#allocation6 + $0xa5c] ss:$24 sps:$4 sm:$0xff]  }
 0x17b   :  { %2694 = vmatpush1.bf16.msra.mxu1 %v3889_v19  ;;  %v3960_v19 = vld [vmem:[#allocation6 + $0xa64] ss:$24 sps:$4 sm:$0xff]  }
 0x17c   :  { %2858 = vmatpush1.bf16.msra.mxu0 %v3892_v22  ;;  %2695 = vmatprep.subr.bf16.mxu1 %v3897_v23  ;;  %v2930_v23 = vrot.slane %v4266_v3, %v479_v52  ;;  %v3999_v52 = vld [vmem:[#allocation6 + $0xbac] ss:$24 sps:$4 sm:$0xff]  }
 0x17d   :  { %2859 = vmatprep.subr.bf16.mxu0 %v3900_v24 }
 0x17f   :  { %2696 = vmatpush1.bf16.msra.mxu1 %v3895_v25 }
 0x180   :  { %2860 = vmatpush1.bf16.msra.mxu0 %v3898_v26  ;;  %2697 = vmatprep.subr.bf16.mxu1 %v3903_v27  ;;  %v3955_v26 = vld [vmem:[#allocation6 + $0xa58] ss:$24 sps:$4 sm:$0xff]  }
 0x181   :  { %2861 = vmatprep.subr.bf16.mxu0 %v3906_v28  ;;  %v3958_v27 = vld [vmem:[#allocation6 + $0xa60] ss:$24 sps:$4 sm:$0xff]  }
 0x183   :  { %2698 = vmatpush1.bf16.msra.mxu1 %v3901_v29  ;;  %v3963_v29 = vld [vmem:[#allocation6 + $0xa8c] ss:$24 sps:$4 sm:$0xff]  }
 0x184   :  { %2862 = vmatpush1.bf16.msra.mxu0 %v3904_v30  ;;  %2699 = vmatprep.subr.bf16.mxu1 %v3909_v31  ;;  %v3966_v30 = vld [vmem:[#allocation6 + $0xa94] ss:$24 sps:$4 sm:$0xff]  }
 0x185   :  { %2863 = vmatprep.subr.bf16.mxu0 %v3912_v32 }
 0x187   :  { %2700 = vmatpush1.bf16.msra.mxu1 %v3907_v33  ;;  %v3961_v33 = vld [vmem:[#allocation6 + $0xa88] ss:$24 sps:$4 sm:$0xff]  }
 0x188   :  { %2864 = vmatpush1.bf16.msra.mxu0 %v3910_v34  ;;  %2710 = vmatprep.subr.bf16.mxu1 %v3915_v35  ;;  %v3964_v34 = vld [vmem:[#allocation6 + $0xa90] ss:$24 sps:$4 sm:$0xff]   ;;  %v3969_v35 = vld [vmem:[#allocation6 + $0xabc] ss:$24 sps:$4 sm:$0xff]  }
 0x189   :  { %2874 = vmatprep.subr.bf16.mxu0 %v3918_v36  ;;  %v3972_v36 = vld [vmem:[#allocation6 + $0xac4] ss:$24 sps:$4 sm:$0xff]  }
 0x18a   :  { %2702 = vmatmul.mubr.bf16.vlgmr.msra.gmra.mrb[4].mxu1 %v4228_v11 }
 0x18b   :  { %2866 = vmatmul.mubr.bf16.vlgmr.msra.gmra.mrb[4].mxu0 %v4228_v11  ;;  %2711 = vmatpush1.bf16.msra.mxu1 %v3913_v38  ;;  %v3933_v11 = vld [vmem:[#allocation6 + $0x99c] ss:$24 sps:$4 sm:$0xff]   ;;  %v3967_v38 = vld [vmem:[#allocation6 + $0xab8] ss:$24 sps:$4 sm:$0xff]  }
 0x18c   :  { %2875 = vmatpush1.bf16.msra.mxu0 %v3916_v39  ;;  %2712 = vmatprep.subr.bf16.mxu1 %v3921_v41  ;;  %v3970_v39 = vld [vmem:[#allocation6 + $0xac0] ss:$24 sps:$4 sm:$0xff]   ;;  %v3975_v41 = vld [vmem:[#allocation6 + $0xaec] ss:$24 sps:$4 sm:$0xff]  }
 0x18d   :  { %2876 = vmatprep.subr.bf16.mxu0 %v3924_v10  ;;  %2742 = vmatprep.mubr.bf16.mxu1 %v4234_v40  ;;  %v3978_v10 = vld [vmem:[#allocation6 + $0xaf4] ss:$24 sps:$4 sm:$0xff]  }
 0x18e   :  { %2906 = vmatprep.mubr.bf16.mxu0 %v4234_v40  ;;  %v475_v40 = vsub.s32 0, %v4258_v47 }
 0x18f   :  { %2713 = vmatpush1.bf16.msra.mxu1 %v3919_v48  ;;  %v3973_v48 = vld [vmem:[#allocation6 + $0xae8] ss:$24 sps:$4 sm:$0xff]  }
 0x190   :  { %2877 = vmatpush1.bf16.msra.mxu0 %v3922_v42  ;;  %2714 = vmatprep.subr.bf16.mxu1 %v3927_v43  ;;  %v476_v59 = vrot.slane %v4262_v56, %v475_v40  ;;  %v2926_v15 = vrot.slane %v4266_v3, %v475_v40  ;;  %v3976_v42 = vld [vmem:[#allocation6 + $0xaf0] ss:$24 sps:$4 sm:$0xff]   ;;  %v3981_v43 = vld [vmem:[#allocation6 + $0xb1c] ss:$24 sps:$4 sm:$0xff]   ;;  %v3994_v40 = vld [vmem:[#allocation6 + $0xb80] ss:$24 sps:$4 sm:$0xff]  }
 0x191   :  { %2878 = vmatprep.subr.bf16.mxu0 %v3930_v44  ;;  %v3984_v44 = vld [vmem:[#allocation6 + $0xb24] ss:$24 sps:$4 sm:$0xff]  }
 0x193   :  { %2715 = vmatpush1.bf16.msra.mxu1 %v3925_v45  ;;  %v3982_v45 = vld [vmem:[#allocation6 + $0xb20] ss:$24 sps:$4 sm:$0xff]  }
 0x194   :  { %2879 = vmatpush1.bf16.msra.mxu0 %v3928_v46  ;;  %2716 = vmatprep.subr.bf16.mxu1 %v3933_v11  ;;  %v3987_v46 = vld [vmem:[#allocation6 + $0xb4c] ss:$24 sps:$4 sm:$0xff]  }
 0x195   :  { %2880 = vmatprep.subr.bf16.mxu0 %v3936_v37  ;;  %v3990_v11 = vld [vmem:[#allocation6 + $0xb54] ss:$24 sps:$4 sm:$0xff]   ;;  %v3985_v37 = vld [vmem:[#allocation6 + $0xb48] ss:$24 sps:$4 sm:$0xff]  }
 0x197   :  { %2717 = vmatpush1.bf16.msra.mxu1 %v3931_v49  ;;  %v3988_v49 = vld [vmem:[#allocation6 + $0xb50] ss:$24 sps:$4 sm:$0xff]  }
 0x198   :  { %2881 = vmatpush1.bf16.msra.mxu0 %v3934_v53  ;;  %2718 = vmatprep.subr.bf16.mxu1 %v3939_v50  ;;  %v3993_v53 = vld [vmem:[#allocation6 + $0xb7c] ss:$24 sps:$4 sm:$0xff]  }
 0x199   :  { %2882 = vmatprep.subr.bf16.mxu0 %v3942_v51  ;;  %v3996_v50 = vld [vmem:[#allocation6 + $0xb84] ss:$24 sps:$4 sm:$0xff]   ;;  %v3991_v51 = vld [vmem:[#allocation6 + $0xb78] ss:$24 sps:$4 sm:$0xff]  }
 0x19b   :  { %2719 = vmatpush1.bf16.msra.mxu1 %v3937_v54  ;;  %v4002_v54 = vld [vmem:[#allocation6 + $0xbb4] ss:$24 sps:$4 sm:$0xff]  }
 0x19c   :  { %2883 = vmatpush1.bf16.msra.mxu0 %v3940_v55  ;;  %2720 = vmatprep.subr.bf16.mxu1 %v3945_v57  ;;  %v3997_v55 = vld [vmem:[#allocation6 + $0xba8] ss:$24 sps:$4 sm:$0xff]  }
 0x19d   :  { %2884 = vmatprep.subr.bf16.mxu0 %v3948_v58  ;;  %v2498_v1 = vpop.f32.mrb[0].mxu1  ;;  %v4000_v57 = vld [vmem:[#allocation6 + $0xbb0] ss:$24 sps:$4 sm:$0xff]   ;;  %v4005_v58 = vld [vmem:[#allocation6 + $0xbdc] ss:$24 sps:$4 sm:$0xff]  }
 0x19e   :  { %v2580_v2 = vpop.f32.mrb[0].mxu0  ;;  %v3386_v4 = vadd.f32 %v2498_v1, %v476_v59  ;;  %v2500_v5 = vpop.f32.mrb[1].mxu1  ;;  %v4008_v59 = vld [vmem:[#allocation6 + $0xbe4] ss:$24 sps:$4 sm:$0xff]   ;;  %v495_v1 = vsub.s32 5, %v4258_v47 }
 0x19f   :  { %v2582_v6 = vpop.f32.mrb[1].mxu0  ;;  %v3388_v7 = vadd.f32 %v2500_v5, %v480_v60  ;;  %v2502_v8 = vpop.f32.mrb[2].mxu1  ;;  %2721 = vmatpush1.bf16.msra.mxu1 %v3943_v61  ;;  %v4003_v60 = vld [vmem:[#allocation6 + $0xbd8] ss:$24 sps:$4 sm:$0xff]  }
 0x1a0   :  { %v2584_v9 = vpop.f32.mrb[2].mxu0  ;;  %2885 = vmatpush1.bf16.msra.mxu0 %v3946_v62  ;;  %v3387_v14 = vadd.f32 %v3386_v4, %v2580_v2  ;;  %v2503_v16 = vpop.f32.mrb[3].mxu1  ;;  %2722 = vmatprep.subr.bf16.mxu1 %v3951_v63  ;;  %v4006_v61 = vld [vmem:[#allocation6 + $0xbe0] ss:$24 sps:$4 sm:$0xff]   ;;  %v483_v62 = vsub.s32 2, %v4258_v47  ;;  %v491_v63 = vsub.s32 4, %v4258_v47 }
 0x1a1   :  { %v2585_v17 = vpop.f32.mrb[3].mxu0  ;;  %2886 = vmatprep.subr.bf16.mxu0 %v3954_v0  ;;  %v3389_v22 = vadd.f32 %v3388_v7, %v2582_v6  ;;  %v487_v0 = vsub.s32 3, %v4258_v47  ;;  %v496_v6 = vrot.slane %v4262_v56, %v495_v1 }
 0x1a2   :  { %v2915_v24 = vmax.f32 %v3387_v14, 0.0  ;;  %v484_v2 = vrot.slane %v4262_v56, %v483_v62  ;;  %v492_v4 = vrot.slane %v4262_v56, %v491_v63 }
 0x1a3   :  { %v2916_v25 = vmax.f32 %v3389_v22, 0.0  ;;  %2723 = vmatpush1.bf16.msra.mxu1 %v3949_v12  ;;  %v488_v5 = vrot.slane %v4262_v56, %v487_v0  ;;  %v2938_v16 = vrot.slane %v4266_v3, %v487_v0 }
 0x1a4   :  { %2887 = vmatpush1.bf16.msra.mxu0 %v3952_v13  ;;  %v2953_v28 = vmul.f32 %v2926_v15, %v2915_v24  ;;  %2724 = vmatprep.subr.bf16.mxu1 %v3957_v18 }
 0x1a5   :  { %2888 = vmatprep.subr.bf16.mxu0 %v3960_v19  ;;  %v2954_v31 = vmul.f32 %v2930_v23, %v2916_v25 }
 0x1a7   :  { %v4270_v32 = vadd.f32 %v2954_v31, %v2953_v28  ;;  %2725 = vmatpush1.bf16.msra.mxu1 %v3955_v26  ;;  %v2942_v26 = vrot.slane %v4266_v3, %v491_v63 }
 0x1a8   :  { %2889 = vmatpush1.bf16.msra.mxu0 %v3958_v27  ;;  %2726 = vmatprep.subr.bf16.mxu1 %v3963_v29 }
 0x1a9   :  { %2890 = vmatprep.subr.bf16.mxu0 %v3966_v30  ;;  %v2946_v30 = vrot.slane %v4266_v3, %v495_v1 }
 0x1ab   :  { %2727 = vmatpush1.bf16.msra.mxu1 %v3961_v33 }
 0x1ac   :  { %2891 = vmatpush1.bf16.msra.mxu0 %v3964_v34  ;;  %2728 = vmatprep.subr.bf16.mxu1 %v3969_v35 }
 0x1ad   :  { %2892 = vmatprep.subr.bf16.mxu0 %v3972_v36 }
 0x1af   :  { %2729 = vmatpush1.bf16.msra.mxu1 %v3967_v38  ;;  %v2967_v38 = vstv %s4306_s4  ;;  %s4105_s4 = scalar_lea.vmem %s2992_s17, 1024 }
 0x1b0   :  { %2893 = vmatpush1.bf16.msra.mxu0 %v3970_v39  ;;  %2730 = vmatprep.subr.bf16.mxu1 %v3975_v41  ;;  %p4106_p4 = scmp.ne.s32.totalorder %s2992_s17, %s4105_s4  ;;  %p4111_p6 = scmp.lt.s32.totalorder %s4105_s4, %s4105_s4 }
 0x1b1   :  { %2894 = vmatprep.subr.bf16.mxu0 %v3978_v10  ;;  %v4009_v10 = vld [vmem:[#allocation3] sm:$0xff] }
 0x1b2   :  { %p4112_p7 = por %p4111_p6, %p4110_p5 }
 0x1b3   :  { %2731 = vmatpush1.bf16.msra.mxu1 %v3973_v48 }
 0x1b4   :  { %2895 = vmatpush1.bf16.msra.mxu0 %v3976_v42  ;;  %2732 = vmatprep.subr.bf16.mxu1 %v3981_v43  ;;  %v4011_v43 = vld [vmem:[#allocation3 + $0x10] sm:$0xff]  ;;  %p4113_p8 = pnand %p4112_p7, %p4106_p4 }
 0x1b5   :  { %2896 = vmatprep.subr.bf16.mxu0 %v3984_v44  ;;  %v4012_v44 = vld [vmem:[#allocation3 + $0x18] sm:$0xff] }
 0x1b7   :  { %2733 = vmatpush1.bf16.msra.mxu1 %v3979_v20 }
 0x1b8   :  { %2897 = vmatpush1.bf16.msra.mxu0 %v3982_v45  ;;  %2734 = vmatprep.subr.bf16.mxu1 %v3987_v46  ;;  %v4013_v45 = vld [vmem:[#allocation3 + $0x20] sm:$0xff] }
 0x1b9   :  { %2898 = vmatprep.subr.bf16.mxu0 %v3990_v11  ;;  %v4014_v11 = vld [vmem:[#allocation3 + $0x28] sm:$0xff] }
 0x1bb   :  { %2735 = vmatpush1.bf16.msra.mxu1 %v3985_v37 }
 0x1bc   :  { %2899 = vmatpush1.bf16.msra.mxu0 %v3988_v49  ;;  %2736 = vmatprep.subr.bf16.mxu1 %v3993_v53  ;;  %v4015_v49 = vld [vmem:[#allocation3 + $0x30] sm:$0xff] }
 0x1bd   :  { %2900 = vmatprep.subr.bf16.mxu0 %v3996_v50  ;;  %v4016_v50 = vld [vmem:[#allocation3 + $0x38] sm:$0xff] }
 0x1bf   :  { %2737 = vmatpush1.bf16.msra.mxu1 %v3991_v51 }
 0x1c0   :  { %2901 = vmatpush1.bf16.msra.mxu0 %v3994_v40  ;;  %2738 = vmatprep.subr.bf16.mxu1 %v3999_v52 }
 0x1c1   :  { %2902 = vmatprep.subr.bf16.mxu0 %v4002_v54 }
 0x1c3   :  { %2739 = vmatpush1.bf16.msra.mxu1 %v3997_v55 }
 0x1c4   :  { %2903 = vmatpush1.bf16.msra.mxu0 %v4000_v57  ;;  %2740 = vmatprep.subr.bf16.mxu1 %v4005_v58 }
 0x1c5   :  { %2904 = vmatprep.subr.bf16.mxu0 %v4008_v59 }
 0x1c7   :  { %2741 = vmatpush1.bf16.msra.mxu1 %v4003_v60 }
 0x1c8   :  { %2905 = vmatpush1.bf16.msra.mxu0 %v4006_v61 }
 0x1ca   :  { %2743 = vmatmul.mubr.bf16.vlgmr.msra.gmra.mrb[4].mxu1 %v4240_v21 }
 0x1cb   :  { %2907 = vmatmul.mubr.bf16.vlgmr.msra.gmra.mrb[4].mxu0 %v4240_v21  ;;  %v2934_v21 = vrot.slane %v4266_v3, %v483_v62 }
 0x29d   :  { %v2744_v7 = vpop.f32.mrb[4].mxu1 }
 0x29e   :  { %v2908_v8 = vpop.f32.mrb[4].mxu0  ;;  %v3390_v9 = vadd.f32 %v2744_v7, %v484_v2  ;;  %v2746_v13 = vpop.f32.mrb[5].mxu1 }
 0x29f   :  { %v3392_v12 = vadd.f32 %v2908_v8, %v492_v4  ;;  %v2910_v14 = vpop.f32.mrb[5].mxu0  ;;  %v3391_v15 = vadd.f32 %v2746_v13, %v488_v5  ;;  %v2748_v47 = vpop.f32.mrb[6].mxu1 }
 0x2a0   :  { %v2912_v17 = vpop.f32.mrb[6].mxu0  ;;  %v2917_v18 = vmax.f32 %v3390_v9, 0.0  ;;  %v3393_v19 = vadd.f32 %v2910_v14, %v496_v6  ;;  %v2749_v22 = vpop.f32.mrb[7].mxu1 }
 0x2a1   :  { %v2913_v23 = vpop.f32.mrb[7].mxu0  ;;  %v2918_v24 = vmax.f32 %v3391_v15, 0.0  ;;  %v2919_v56 = vmax.f32 %v3392_v12, 0.0 }
 0x2a2   :  { %v2955_v25 = vmul.f32 %v2934_v21, %v2917_v18  ;;  %v2920_v29 = vmax.f32 %v3393_v19, 0.0 }
 0x2a3   :  { %v2956_v27 = vmul.f32 %v2938_v16, %v2918_v24  ;;  %v2957_v31 = vmul.f32 %v2942_v26, %v2919_v56 }
 0x2a4   :  { %v2960_v28 = vadd.f32 %v4270_v32, %v2955_v25  ;;  %v2958_v34 = vmul.f32 %v2946_v30, %v2920_v29  ;;  %v4010_v32 = vld [vmem:[#allocation3 + $0x8] sm:$0xff] }
 0x2a6   :  { %v2961_v33 = vadd.f32 %v2960_v28, %v2956_v27 }
 0x2a8   :  { %v2962_v35 = vadd.f32 %v2961_v33, %v2957_v31 }
 0x2aa   :  { %v2963_v36 = vadd.f32 %v2962_v35, %v2958_v34 }
 0x2ac   :  { %2964 = vadd.xlane.f32.xlu0 %v2963_v36 }
 0x339   :  { %v2965_v39 = vpop.xlane.xlu0 %2964 }
 0x33a   :  { %v2968_v41 = vadd.f32 %v2967_v38, %v2965_v39 }
 0x33c   :  { %v2969_v48 = vmul.f32 %v4009_v10, %v2968_v41  ;;  %v2970_v42 = vmul.f32 %v4010_v32, %v2968_v41  ;;  %v2971_v3 = vmul.f32 %v4011_v43, %v2968_v41  ;;  %v2972_v20 = vmul.f32 %v4012_v44, %v2968_v41 }
 0x33d   :  { %v2973_v46 = vmul.f32 %v4013_v45, %v2968_v41  ;;  %v2974_v37 = vmul.f32 %v4014_v11, %v2968_v41  ;;  %v2975_v53 = vmul.f32 %v4015_v49, %v2968_v41  ;;  %v2976_v51 = vmul.f32 %v4016_v50, %v2968_v41 }
 0x33e   :  { %2977 = vst [vmem:[#allocation11] sm:$0xff] %v2969_v48  ;;  %2978 = vst [vmem:[#allocation11 + $0x8] sm:$0xff] %v2970_v42 }
 0x33f   :  { %2979 = vst [vmem:[#allocation11 + $0x10] sm:$0xff] %v2971_v3  ;;  %2980 = vst [vmem:[#allocation11 + $0x18] sm:$0xff] %v2972_v20 }
 0x340   :  { %2981 = vst [vmem:[#allocation11 + $0x20] sm:$0xff] %v2973_v46  ;;  %2982 = vst [vmem:[#allocation11 + $0x28] sm:$0xff] %v2974_v37 }
 0x341   :  { %2983 = vst [vmem:[#allocation11 + $0x30] sm:$0xff] %v2975_v53  ;;  %2984 = vst [vmem:[#allocation11 + $0x38] sm:$0xff] %v2976_v51 }
 0x342   :  { %4116 = shalt.err (!%p4113_p8)
}
 0x343   :  { %s4117_s19 = scalar_lea.hbm %s4307_s5, 1024 }
 0x344   :  { %p4118_p9 = scmp.ne.s32.totalorder %s4307_s5, %s4117_s19  ;;  %p4121_p10 = scmp.lt.u32.totalorder %s4117_s19, %s4307_s5 }
 0x346   :  { %p4123_p11 = pnand %p4121_p10, %p4118_p9 }
 0x348   :  { %4126 = shalt.err (!%p4123_p11)
}
 0x349   :  { %2994 = dma.vmem_to_hbm [thread:$0]  %s2992_s17, 1024, %s4307_s5, [#allocation5]  }
 0x34a   :  { %4133 = dma.done.wait [#allocation5], 1024  }
 0x34b   :  { %4134 = vsyncadd [#allocation5], 4294966272 }
 0x34c   :  { %2998 = vsyncpa [#allocation4], 1 }
 0x34d   :  { %2999 = vsyncpa [#allocation7], 1 }
 0x34e   :  { %3000 = vsyncpa [#allocation10], 1 }
 0x34f   :  { %3001 = vsyncpa [#allocation5], 1 }

</bundles_post_ra>
